<compile_context>
chip_gen: v7x
topology: tpu7x:2x2x1
jax: 0.10.0
libtpu: 0.0.40
codegen_flags: <defaults>
</compile_context>

<pallas_src>
import functools
import math

import jax
import jax.numpy as jnp
from jax import lax
from jax.experimental import pallas as pl
from jax.experimental.pallas import tpu as pltpu


def _bias_free_ln_kernel(x_ref, w_ref, o_ref, *, inv_c, eps):
    # x_ref: (TILE_ROWS, C) tile of rows, w_ref: (1, C) weight, o_ref: (TILE_ROWS, C)
    x = x_ref[...].astype(jnp.float32)                        # f32 accumulation
    mean = jnp.sum(x, axis=-1, keepdims=True) * inv_c         # XLU reduce, VPU mul
    xc = x - mean
    var = jnp.sum(xc * xc, axis=-1, keepdims=True) * inv_c    # unbiased=False
    rstd = lax.rsqrt(var + eps)                               # EUP (free slot)
    w = w_ref[...].astype(jnp.float32)                        # (1, C)
    # Bias-free: scale the ORIGINAL x (no mean subtraction in the output).
    o_ref[...] = (x * rstd * w).astype(o_ref.dtype)


def _pick_row_tile(n_rows, n_cols, bytes_per_elem=4, target_bytes=2 << 20):
    """Largest multiple-of-8 row tile whose (tile, C) f32 buffer stays under
    ~2 MiB.  Double-buffered input + output then stays < ~8 MiB, which fits the
    v5e 16 MiB scoped-VMEM default (and trivially v6e/v7x)."""
    if n_rows <= 8:
        return n_rows  # full-extent block (always a legal BlockSpec)
    cap = ((n_rows + 7) // 8) * 8  # never allocate more rows than we need
    tile = 8
    for cand in (8, 16, 32, 64, 128, 256, 512, 1024, 2048):
        if cand > cap:
            break
        if cand * n_cols * bytes_per_elem <= target_bytes:
            tile = cand
    # If the whole (row-padded) problem fits in one tile, take it in one shot.
    if cap * n_cols * bytes_per_elem <= target_bytes and cap > tile:
        tile = cap
    return tile


def bias_free_layer_norm(x, weight, eps=1e-5):
    """x: (..., C); weight: (C,). Normalizes over the last dim."""
    orig_shape = x.shape
    c = orig_shape[-1]
    assert weight.shape == (c,)
    n_rows = math.prod(orig_shape[:-1])

    x2 = x.reshape(n_rows, c)
    w2 = weight.reshape(1, c)

    tile_rows = _pick_row_tile(n_rows, c)
    grid = (pl.cdiv(n_rows, tile_rows),)

    kernel = functools.partial(_bias_free_ln_kernel, inv_c=1.0 / c, eps=float(eps))

    out = pl.pallas_call(
        kernel,
        out_shape=jax.ShapeDtypeStruct((n_rows, c), x.dtype),
        grid_spec=pltpu.PrefetchScalarGridSpec(
            num_scalar_prefetch=0,
            grid=grid,
            in_specs=[
                pl.BlockSpec((tile_rows, c), lambda i: (i, 0)),  # streamed rows
                pl.BlockSpec((1, c), lambda i: (0, 0)),          # weight (resident)
            ],
            out_specs=pl.BlockSpec((tile_rows, c), lambda i: (i, 0)),
        ),
        compiler_params=pltpu.CompilerParams(
            dimension_semantics=("parallel",),   # megacore: TCs take disjoint row tiles
        ),
    )(x2, w2)

    return out.reshape(orig_shape)


def bias_free_layer_norm_ref(x, weight, eps=1e-5):
    # Pure-JAX reference matching the PyTorch forward.
    sigma = jnp.var(x, axis=-1, keepdims=True)        # ddof=0 == unbiased=False
    return x / jnp.sqrt(sigma + eps) * weight


if __name__ == "__main__":
    key = jax.random.PRNGKey(0)
    kx, kw = jax.random.split(key, 2)

    # Small shapes consistent with the module: batch=2, 16x16 spatial tokens,
    # normalized_shape (channels) = 32, channels-last for the LN.
    B, H, W, C = 2, 16, 16, 32
    x = jax.random.normal(kx, (B, H, W, C), dtype=jnp.float32)
    # nn.Parameter inits to ones; use a non-trivial weight to exercise the scale.
    weight = 1.0 + 0.1 * jax.random.normal(kw, (C,), dtype=jnp.float32)

    out = bias_free_layer_norm(x, weight)
    out = jax.block_until_ready(out)

    ref = bias_free_layer_norm_ref(x, weight)
    assert out.shape == x.shape
    assert jnp.allclose(out, ref, atol=1e-5, rtol=1e-5)

    print("KERNEL_OK")
</pallas_src>

<mosaic_0001>
module attributes {stable_mosaic.version = 11 : i64} {
  func.func @_bias_free_ln_kernel(%arg0: i32, %arg1: memref<512x32xf32, #tpu.memory_space<vmem>>, %arg2: memref<1x32xf32, #tpu.memory_space<vmem>>, %arg3: memref<512x32xf32, #tpu.memory_space<vmem>>) attributes {dimension_semantics = [#tpu.dimension_semantics<parallel>], iteration_bounds = array<i64: 1>, scalar_prefetch = 0 : i64, scratch_operands = 0 : i64, tpu.core_type = #tpu.core_type<tc>, window_params = [{transform_indices = @transform_0, window_bounds = array<i64: 512, 32>}, {pipeline_mode = #tpu.pipeline_mode<synchronous>, transform_indices = @transform_1, window_bounds = array<i64: 1, 32>}, {transform_indices = @transform_2, window_bounds = array<i64: 512, 32>}]} {
    %c0 = arith.constant 0 : index
    %c0_0 = arith.constant 0 : index
    %0 = vector.load %arg1[%c0, %c0_0] : memref<512x32xf32, #tpu.memory_space<vmem>>, vector<512x32xf32>
    %cst = arith.constant dense<0.000000e+00> : vector<512xf32>
    %1 = vector.multi_reduction <add>, %0, %cst [1] : vector<512x32xf32> to vector<512xf32>
    %2 = vector.shape_cast %1 : vector<512xf32> to vector<512x1xf32>
    %cst_1 = arith.constant 3.125000e-02 : f32
    %3 = vector.broadcast %cst_1 : f32 to vector<512x1xf32>
    %4 = arith.mulf %2, %3 : vector<512x1xf32>
    %5 = vector.broadcast %4 : vector<512x1xf32> to vector<512x32xf32>
    %6 = arith.subf %0, %5 : vector<512x32xf32>
    %7 = arith.mulf %6, %6 : vector<512x32xf32>
    %cst_2 = arith.constant dense<0.000000e+00> : vector<512xf32>
    %8 = vector.multi_reduction <add>, %7, %cst_2 [1] : vector<512x32xf32> to vector<512xf32>
    %9 = vector.shape_cast %8 : vector<512xf32> to vector<512x1xf32>
    %cst_3 = arith.constant 3.125000e-02 : f32
    %10 = vector.broadcast %cst_3 : f32 to vector<512x1xf32>
    %11 = arith.mulf %9, %10 : vector<512x1xf32>
    %cst_4 = arith.constant 9.99999974E-6 : f32
    %12 = vector.broadcast %cst_4 : f32 to vector<512x1xf32>
    %13 = arith.addf %11, %12 : vector<512x1xf32>
    %14 = math.rsqrt %13 : vector<512x1xf32>
    %c0_5 = arith.constant 0 : index
    %c0_6 = arith.constant 0 : index
    %15 = vector.load %arg2[%c0_5, %c0_6] : memref<1x32xf32, #tpu.memory_space<vmem>>, vector<1x32xf32>
    %16 = vector.broadcast %14 : vector<512x1xf32> to vector<512x32xf32>
    %17 = arith.mulf %0, %16 : vector<512x32xf32>
    %18 = vector.broadcast %15 : vector<1x32xf32> to vector<512x32xf32>
    %19 = arith.mulf %17, %18 : vector<512x32xf32>
    %c0_7 = arith.constant 0 : index
    %c0_8 = arith.constant 0 : index
    %20 = vector.load %arg3[%c0_7, %c0_8] : memref<512x32xf32, #tpu.memory_space<vmem>>, vector<512x32xf32>
    tpu.vector_store %arg3[%c0_7, %c0_8], %19 {strides = array<i32>} : memref<512x32xf32, #tpu.memory_space<vmem>>, vector<512x32xf32>,
    return
  }
  func.func @transform_0(%arg0: i32) -> (i32, i32) {
    %c0_i32 = arith.constant 0 : i32
    %c0_i32_0 = arith.constant 0 : i32
    return %arg0, %c0_i32 : i32, i32
  }
  func.func @transform_1(%arg0: i32) -> (i32, i32) {
    %c0_i32 = arith.constant 0 : i32
    %c0_i32_0 = arith.constant 0 : i32
    %c0_i32_1 = arith.constant 0 : i32
    return %c0_i32, %c0_i32_0 : i32, i32
  }
  func.func @transform_2(%arg0: i32) -> (i32, i32) {
    %c0_i32 = arith.constant 0 : i32
    %c0_i32_0 = arith.constant 0 : i32
    return %arg0, %c0_i32 : i32, i32
  }
}

</mosaic_0001>

<bundles_post_ra>
// kernel: tpu_custom_call.1
= control target key start
LH: loop header
LB: loop body
LE: loop exit
PB: predicated region body
PF: predicated region fallthrough
CT: control target
= control target key end

     0   :  { %vm75_vm0 = vcmask 261120   ;;  %s2348_s0 = inlined_call_operand.vmem [shape: f32[512,32], index: 0, kind: input, shape index: {}]   ;;  %s2349_s1 = inlined_call_operand.vmem [shape: f32[1,32], index: 1, kind: input, shape index: {}]   ;;  %s2350_s2 = inlined_call_operand.vmem [shape: f32[512,32], index: 2, kind: output, shape index: {}]  }
   0x1   :  { %v1258_v0 = vld [vmem:[%s2348_s0] sm:$0xff]  ;;  %v1263_v1 = vld [vmem:[%s2348_s0 + $0x10] sm:$0xff]  ;;  %v1268_v2 = vld [vmem:[%s2348_s0 + $0x8] sm:$0xff] }
   0x2   :  { %v76_v3 = vsel %vm75_vm0, %v1258_v0, 0.0  ;;  %v82_v4 = vsel %vm75_vm0, %v1263_v1, 0.0  ;;  %v1277_v5 = vld [vmem:[%s2348_s0 + $0x18] sm:$0xff]  ;;  %v79_v6 = vsel %vm75_vm0, %v1268_v2, 0.0  ;;  %v1286_v8 = vld [vmem:[%s2348_s0 + $0x28] sm:$0xff]  ;;  %v1291_v9 = vld [vmem:[%s2348_s0 + $0x20] sm:$0xff] }
   0x3   :  { %77 = vadd.xlane.f32.xlu0 %v76_v3  ;;  %83 = vadd.xlane.f32.xlu1 %v82_v4  ;;  %v85_v7 = vsel %vm75_vm0, %v1277_v5, 0.0  ;;  %v91_v10 = vsel %vm75_vm0, %v1286_v8, 0.0  ;;  %v88_v11 = vsel %vm75_vm0, %v1291_v9, 0.0  ;;  %v1300_v12 = vld [vmem:[%s2348_s0 + $0x38] sm:$0xff]  ;;  %v1305_v13 = vld [vmem:[%s2348_s0 + $0x30] sm:$0xff]  ;;  %v1314_v16 = vld [vmem:[%s2348_s0 + $0x48] sm:$0xff] }
   0x4   :  { %v97_v14 = vsel %vm75_vm0, %v1300_v12, 0.0  ;;  %v94_v15 = vsel %vm75_vm0, %v1305_v13, 0.0  ;;  %v1319_v17 = vld [vmem:[%s2348_s0 + $0x40] sm:$0xff]  ;;  %v103_v18 = vsel %vm75_vm0, %v1314_v16, 0.0  ;;  %v1328_v20 = vld [vmem:[%s2348_s0 + $0x58] sm:$0xff]  ;;  %v1333_v21 = vld [vmem:[%s2348_s0 + $0x50] sm:$0xff] }
   0x5   :  { %v100_v19 = vsel %vm75_vm0, %v1319_v17, 0.0  ;;  %v109_v22 = vsel %vm75_vm0, %v1328_v20, 0.0  ;;  %v106_v23 = vsel %vm75_vm0, %v1333_v21, 0.0  ;;  %v1342_v24 = vld [vmem:[%s2348_s0 + $0x68] sm:$0xff]  ;;  %v1347_v25 = vld [vmem:[%s2348_s0 + $0x60] sm:$0xff]  ;;  %v1356_v28 = vld [vmem:[%s2348_s0 + $0x78] sm:$0xff] }
   0x6   :  { %v115_v26 = vsel %vm75_vm0, %v1342_v24, 0.0  ;;  %v112_v27 = vsel %vm75_vm0, %v1347_v25, 0.0  ;;  %v1361_v29 = vld [vmem:[%s2348_s0 + $0x70] sm:$0xff]  ;;  %v121_v30 = vsel %vm75_vm0, %v1356_v28, 0.0  ;;  %v1370_v32 = vld [vmem:[%s2348_s0 + $0x88] sm:$0xff]  ;;  %v1375_v33 = vld [vmem:[%s2348_s0 + $0x80] sm:$0xff] }
   0x7   :  { %80 = vadd.xlane.f32.xlu0 %v79_v6  ;;  %86 = vadd.xlane.f32.xlu1 %v85_v7  ;;  %v118_v31 = vsel %vm75_vm0, %v1361_v29, 0.0  ;;  %v127_v34 = vsel %vm75_vm0, %v1370_v32, 0.0  ;;  %v124_v35 = vsel %vm75_vm0, %v1375_v33, 0.0  ;;  %v1384_v36 = vld [vmem:[%s2348_s0 + $0x98] sm:$0xff]  ;;  %v1389_v37 = vld [vmem:[%s2348_s0 + $0x90] sm:$0xff]  ;;  %v1398_v40 = vld [vmem:[%s2348_s0 + $0xa8] sm:$0xff] }
   0x8   :  { %v133_v38 = vsel %vm75_vm0, %v1384_v36, 0.0  ;;  %v130_v39 = vsel %vm75_vm0, %v1389_v37, 0.0  ;;  %v1403_v41 = vld [vmem:[%s2348_s0 + $0xa0] sm:$0xff]  ;;  %v139_v42 = vsel %vm75_vm0, %v1398_v40, 0.0  ;;  %v1412_v44 = vld [vmem:[%s2348_s0 + $0xb8] sm:$0xff]  ;;  %v1417_v45 = vld [vmem:[%s2348_s0 + $0xb0] sm:$0xff] }
   0x9   :  { %v136_v43 = vsel %vm75_vm0, %v1403_v41, 0.0  ;;  %v145_v46 = vsel %vm75_vm0, %v1412_v44, 0.0  ;;  %v142_v47 = vsel %vm75_vm0, %v1417_v45, 0.0  ;;  %v1426_v48 = vld [vmem:[%s2348_s0 + $0xc8] sm:$0xff]  ;;  %v1431_v49 = vld [vmem:[%s2348_s0 + $0xc0] sm:$0xff]  ;;  %v1440_v52 = vld [vmem:[%s2348_s0 + $0xd8] sm:$0xff] }
   0xa   :  { %v151_v50 = vsel %vm75_vm0, %v1426_v48, 0.0  ;;  %v148_v51 = vsel %vm75_vm0, %v1431_v49, 0.0  ;;  %v1445_v53 = vld [vmem:[%s2348_s0 + $0xd0] sm:$0xff]  ;;  %v157_v54 = vsel %vm75_vm0, %v1440_v52, 0.0  ;;  %v1454_v56 = vld [vmem:[%s2348_s0 + $0xe8] sm:$0xff]  ;;  %v1459_v57 = vld [vmem:[%s2348_s0 + $0xe0] sm:$0xff] }
   0xb   :  { %92 = vadd.xlane.f32.xlu1 %v91_v10  ;;  %89 = vadd.xlane.f32.xlu0 %v88_v11  ;;  %v154_v55 = vsel %vm75_vm0, %v1445_v53, 0.0  ;;  %v163_v58 = vsel %vm75_vm0, %v1454_v56, 0.0  ;;  %v160_v59 = vsel %vm75_vm0, %v1459_v57, 0.0  ;;  %v1468_v60 = vld [vmem:[%s2348_s0 + $0xf8] sm:$0xff]  ;;  %v1473_v61 = vld [vmem:[%s2348_s0 + $0xf0] sm:$0xff]  ;;  %v1482_v3 = vld [vmem:[%s2348_s0 + $0x108] sm:$0xff] }
   0xc   :  { %v169_v62 = vsel %vm75_vm0, %v1468_v60, 0.0  ;;  %v166_v63 = vsel %vm75_vm0, %v1473_v61, 0.0  ;;  %v1487_v4 = vld [vmem:[%s2348_s0 + $0x100] sm:$0xff]  ;;  %v175_v6 = vsel %vm75_vm0, %v1482_v3, 0.0  ;;  %v1496_v10 = vld [vmem:[%s2348_s0 + $0x118] sm:$0xff]  ;;  %v1501_v11 = vld [vmem:[%s2348_s0 + $0x110] sm:$0xff] }
   0xd   :  { %v172_v7 = vsel %vm75_vm0, %v1487_v4, 0.0 }
   0xf   :  { %98 = vadd.xlane.f32.xlu1 %v97_v14  ;;  %95 = vadd.xlane.f32.xlu0 %v94_v15  ;;  %v181_v14 = vsel %vm75_vm0, %v1496_v10, 0.0  ;;  %v178_v15 = vsel %vm75_vm0, %v1501_v11, 0.0 }
  0x13   :  { %104 = vadd.xlane.f32.xlu1 %v103_v18  ;;  %101 = vadd.xlane.f32.xlu0 %v100_v19  ;;  %v1510_v18 = vld [vmem:[%s2348_s0 + $0x128] sm:$0xff]  ;;  %v1515_v19 = vld [vmem:[%s2348_s0 + $0x120] sm:$0xff] }
  0x17   :  { %110 = vadd.xlane.f32.xlu1 %v109_v22  ;;  %107 = vadd.xlane.f32.xlu0 %v106_v23  ;;  %v187_v22 = vsel %vm75_vm0, %v1510_v18, 0.0  ;;  %v184_v23 = vsel %vm75_vm0, %v1515_v19, 0.0 }
  0x1b   :  { %116 = vadd.xlane.f32.xlu1 %v115_v26  ;;  %113 = vadd.xlane.f32.xlu0 %v112_v27  ;;  %v1524_v26 = vld [vmem:[%s2348_s0 + $0x138] sm:$0xff]  ;;  %v1529_v27 = vld [vmem:[%s2348_s0 + $0x130] sm:$0xff] }
  0x1f   :  { %122 = vadd.xlane.f32.xlu1 %v121_v30  ;;  %119 = vadd.xlane.f32.xlu0 %v118_v31  ;;  %v193_v30 = vsel %vm75_vm0, %v1524_v26, 0.0  ;;  %v190_v31 = vsel %vm75_vm0, %v1529_v27, 0.0 }
  0x23   :  { %128 = vadd.xlane.f32.xlu1 %v127_v34  ;;  %125 = vadd.xlane.f32.xlu0 %v124_v35  ;;  %v1538_v34 = vld [vmem:[%s2348_s0 + $0x148] sm:$0xff]  ;;  %v1543_v35 = vld [vmem:[%s2348_s0 + $0x140] sm:$0xff] }
  0x27   :  { %134 = vadd.xlane.f32.xlu1 %v133_v38  ;;  %131 = vadd.xlane.f32.xlu0 %v130_v39  ;;  %v199_v38 = vsel %vm75_vm0, %v1538_v34, 0.0  ;;  %v196_v39 = vsel %vm75_vm0, %v1543_v35, 0.0 }
  0x2b   :  { %140 = vadd.xlane.f32.xlu1 %v139_v42  ;;  %137 = vadd.xlane.f32.xlu0 %v136_v43  ;;  %v1552_v42 = vld [vmem:[%s2348_s0 + $0x158] sm:$0xff]  ;;  %v1557_v43 = vld [vmem:[%s2348_s0 + $0x150] sm:$0xff] }
  0x2f   :  { %146 = vadd.xlane.f32.xlu1 %v145_v46  ;;  %143 = vadd.xlane.f32.xlu0 %v142_v47  ;;  %v205_v46 = vsel %vm75_vm0, %v1552_v42, 0.0  ;;  %v202_v47 = vsel %vm75_vm0, %v1557_v43, 0.0 }
  0x33   :  { %152 = vadd.xlane.f32.xlu1 %v151_v50  ;;  %149 = vadd.xlane.f32.xlu0 %v148_v51  ;;  %v1566_v50 = vld [vmem:[%s2348_s0 + $0x168] sm:$0xff]  ;;  %v1571_v51 = vld [vmem:[%s2348_s0 + $0x160] sm:$0xff] }
  0x37   :  { %158 = vadd.xlane.f32.xlu1 %v157_v54  ;;  %155 = vadd.xlane.f32.xlu0 %v154_v55  ;;  %v211_v54 = vsel %vm75_vm0, %v1566_v50, 0.0  ;;  %v208_v55 = vsel %vm75_vm0, %v1571_v51, 0.0 }
  0x3b   :  { %164 = vadd.xlane.f32.xlu1 %v163_v58  ;;  %161 = vadd.xlane.f32.xlu0 %v160_v59  ;;  %v1580_v58 = vld [vmem:[%s2348_s0 + $0x178] sm:$0xff]  ;;  %v1585_v59 = vld [vmem:[%s2348_s0 + $0x170] sm:$0xff] }
  0x3f   :  { %170 = vadd.xlane.f32.xlu1 %v169_v62  ;;  %167 = vadd.xlane.f32.xlu0 %v166_v63  ;;  %v217_v62 = vsel %vm75_vm0, %v1580_v58, 0.0  ;;  %v214_v63 = vsel %vm75_vm0, %v1585_v59, 0.0 }
  0x43   :  { %176 = vadd.xlane.f32.xlu1 %v175_v6  ;;  %173 = vadd.xlane.f32.xlu0 %v172_v7  ;;  %v1594_v6 = vld [vmem:[%s2348_s0 + $0x188] sm:$0xff]  ;;  %v1599_v7 = vld [vmem:[%s2348_s0 + $0x180] sm:$0xff] }
  0x44   :  { %2367 = vst [vmem:[#allocation2_spill] sm:$0xff] %v1594_v6  ;;  %2368 = vst [vmem:[#allocation3_spill] sm:$0xff] %v1599_v7 }
  0x47   :  { %182 = vadd.xlane.f32.xlu1 %v181_v14  ;;  %179 = vadd.xlane.f32.xlu0 %v178_v15  ;;  %v223_v14 = vsel %vm75_vm0, %v1594_v6, 0.0  ;;  %v220_v15 = vsel %vm75_vm0, %v1599_v7, 0.0 }
  0x4b   :  { %188 = vadd.xlane.f32.xlu1 %v187_v22  ;;  %185 = vadd.xlane.f32.xlu0 %v184_v23  ;;  %v1608_v22 = vld [vmem:[%s2348_s0 + $0x198] sm:$0xff]  ;;  %v1613_v23 = vld [vmem:[%s2348_s0 + $0x190] sm:$0xff] }
  0x4c   :  { %2369 = vst [vmem:[#allocation4_spill] sm:$0xff] %v1608_v22  ;;  %2370 = vst [vmem:[#allocation5_spill] sm:$0xff] %v1613_v23 }
  0x4f   :  { %194 = vadd.xlane.f32.xlu1 %v193_v30  ;;  %191 = vadd.xlane.f32.xlu0 %v190_v31  ;;  %v229_v30 = vsel %vm75_vm0, %v1608_v22, 0.0  ;;  %v226_v31 = vsel %vm75_vm0, %v1613_v23, 0.0 }
  0x53   :  { %200 = vadd.xlane.f32.xlu1 %v199_v38  ;;  %197 = vadd.xlane.f32.xlu0 %v196_v39  ;;  %v1622_v38 = vld [vmem:[%s2348_s0 + $0x1a8] sm:$0xff]  ;;  %v1627_v39 = vld [vmem:[%s2348_s0 + $0x1a0] sm:$0xff] }
  0x54   :  { %2371 = vst [vmem:[#allocation6_spill] sm:$0xff] %v1622_v38  ;;  %2372 = vst [vmem:[#allocation7_spill] sm:$0xff] %v1627_v39 }
  0x57   :  { %206 = vadd.xlane.f32.xlu1 %v205_v46  ;;  %203 = vadd.xlane.f32.xlu0 %v202_v47  ;;  %v235_v46 = vsel %vm75_vm0, %v1622_v38, 0.0  ;;  %v232_v47 = vsel %vm75_vm0, %v1627_v39, 0.0 }
  0x5b   :  { %212 = vadd.xlane.f32.xlu1 %v211_v54  ;;  %209 = vadd.xlane.f32.xlu0 %v208_v55  ;;  %v1636_v54 = vld [vmem:[%s2348_s0 + $0x1b8] sm:$0xff]  ;;  %v1641_v55 = vld [vmem:[%s2348_s0 + $0x1b0] sm:$0xff] }
  0x5c   :  { %2373 = vst [vmem:[#allocation8_spill] sm:$0xff] %v1636_v54  ;;  %2374 = vst [vmem:[#allocation9_spill] sm:$0xff] %v1641_v55 }
  0x5f   :  { %218 = vadd.xlane.f32.xlu1 %v217_v62  ;;  %215 = vadd.xlane.f32.xlu0 %v214_v63  ;;  %v241_v62 = vsel %vm75_vm0, %v1636_v54, 0.0  ;;  %v238_v63 = vsel %vm75_vm0, %v1641_v55, 0.0 }
  0x63   :  { %224 = vadd.xlane.f32.xlu1 %v223_v14  ;;  %221 = vadd.xlane.f32.xlu0 %v220_v15  ;;  %v1650_v14 = vld [vmem:[%s2348_s0 + $0x1c8] sm:$0xff]  ;;  %v1655_v15 = vld [vmem:[%s2348_s0 + $0x1c0] sm:$0xff] }
  0x64   :  { %2375 = vst [vmem:[#allocation10_spill] sm:$0xff] %v1650_v14  ;;  %2376 = vst [vmem:[#allocation11_spill] sm:$0xff] %v1655_v15 }
  0x67   :  { %230 = vadd.xlane.f32.xlu1 %v229_v30  ;;  %227 = vadd.xlane.f32.xlu0 %v226_v31  ;;  %v247_v30 = vsel %vm75_vm0, %v1650_v14, 0.0  ;;  %v244_v31 = vsel %vm75_vm0, %v1655_v15, 0.0  ;;  %v1678_v15 = vld [vmem:[%s2348_s0 + $0x1e8] sm:$0xff]  ;;  %v1683_v14 = vld [vmem:[%s2348_s0 + $0x1e0] sm:$0xff] }
  0x68   :  { %2379 = vst [vmem:[#allocation14_spill] sm:$0xff] %v1678_v15  ;;  %2380 = vst [vmem:[#allocation15_spill] sm:$0xff] %v1683_v14 }
  0x6b   :  { %236 = vadd.xlane.f32.xlu1 %v235_v46  ;;  %233 = vadd.xlane.f32.xlu0 %v232_v47  ;;  %v1664_v46 = vld [vmem:[%s2348_s0 + $0x1d8] sm:$0xff]  ;;  %v1669_v47 = vld [vmem:[%s2348_s0 + $0x1d0] sm:$0xff] }
  0x6c   :  { %2377 = vst [vmem:[#allocation12_spill] sm:$0xff] %v1664_v46  ;;  %2378 = vst [vmem:[#allocation13_spill] sm:$0xff] %v1669_v47 }
  0x6f   :  { %242 = vadd.xlane.f32.xlu1 %v241_v62  ;;  %239 = vadd.xlane.f32.xlu0 %v238_v63  ;;  %v253_v62 = vsel %vm75_vm0, %v1664_v46, 0.0  ;;  %v250_v63 = vsel %vm75_vm0, %v1669_v47, 0.0  ;;  %v1692_v47 = vld [vmem:[%s2348_s0 + $0x1f8] sm:$0xff]  ;;  %v1697_v46 = vld [vmem:[%s2348_s0 + $0x1f0] sm:$0xff] }
  0x70   :  { %2381 = vst [vmem:[#allocation16_spill] sm:$0xff] %v1692_v47  ;;  %2382 = vst [vmem:[#allocation17_spill] sm:$0xff] %v1697_v46 }
  0x73   :  { %248 = vadd.xlane.f32.xlu1 %v247_v30  ;;  %245 = vadd.xlane.f32.xlu0 %v244_v31  ;;  %v259_v30 = vsel %vm75_vm0, %v1678_v15, 0.0  ;;  %v256_v31 = vsel %vm75_vm0, %v1683_v14, 0.0 }
  0x77   :  { %254 = vadd.xlane.f32.xlu1 %v253_v62  ;;  %251 = vadd.xlane.f32.xlu0 %v250_v63  ;;  %v265_v62 = vsel %vm75_vm0, %v1692_v47, 0.0  ;;  %v262_v63 = vsel %vm75_vm0, %v1697_v46, 0.0 }
  0x7b   :  { %260 = vadd.xlane.f32.xlu1 %v259_v30  ;;  %257 = vadd.xlane.f32.xlu0 %v256_v31 }
  0x7f   :  { %266 = vadd.xlane.f32.xlu1 %v265_v62  ;;  %263 = vadd.xlane.f32.xlu0 %v262_v63 }
  0x90   :  { %v78_v14 = vpop.xlane.xlu0 %77  ;;  %v84_v15 = vpop.xlane.xlu1 %83 }
  0x91   :  { %v268_v55 = vmul.f32 0.03125, %v78_v14  ;;  %v270_v54 = vmul.f32 0.03125, %v84_v15 }
  0x93   :  { %v332_v39 = vsub.f32 %v1258_v0, %v268_v55  ;;  %v334_v38 = vsub.f32 %v1263_v1, %v270_v54 }
  0x94   :  { %v81_v23 = vpop.xlane.xlu0 %80  ;;  %v87_v22 = vpop.xlane.xlu1 %86 }
  0x95   :  { %v269_v30 = vmul.f32 0.03125, %v81_v23  ;;  %v271_v31 = vmul.f32 0.03125, %v87_v22  ;;  %v396_v7 = vmul.f32 %v332_v39, %v332_v39  ;;  %v398_v6 = vmul.f32 %v334_v38, %v334_v38 }
  0x97   :  { %v460_v47 = vsel %vm75_vm0, %v396_v7, 0.0  ;;  %v333_v46 = vsub.f32 %v1268_v2, %v269_v30  ;;  %v335_v62 = vsub.f32 %v1277_v5, %v271_v31  ;;  %v466_v14 = vsel %vm75_vm0, %v398_v6, 0.0 }
  0x98   :  { %461 = vadd.xlane.f32.xlu0 %v460_v47  ;;  %v93_v63 = vpop.xlane.xlu1 %92  ;;  %v90_v15 = vpop.xlane.xlu0 %89 }
  0x99   :  { %v273_v0 = vmul.f32 0.03125, %v93_v63  ;;  %v397_v55 = vmul.f32 %v333_v46, %v333_v46  ;;  %v272_v1 = vmul.f32 0.03125, %v90_v15  ;;  %v399_v54 = vmul.f32 %v335_v62, %v335_v62 }
  0x9b   :  { %v463_v23 = vsel %vm75_vm0, %v397_v55, 0.0  ;;  %v337_v22 = vsub.f32 %v1286_v8, %v273_v0  ;;  %v336_v38 = vsub.f32 %v1291_v9, %v272_v1  ;;  %v469_v5 = vsel %vm75_vm0, %v399_v54, 0.0 }
  0x9c   :  { %467 = vadd.xlane.f32.xlu0 %v466_v14  ;;  %464 = vadd.xlane.f32.xlu1 %v463_v23  ;;  %v99_v2 = vpop.xlane.xlu1 %98  ;;  %v96_v7 = vpop.xlane.xlu0 %95 }
  0x9d   :  { %v275_v39 = vmul.f32 0.03125, %v99_v2  ;;  %v274_v47 = vmul.f32 0.03125, %v96_v7  ;;  %v401_v6 = vmul.f32 %v337_v22, %v337_v22  ;;  %v400_v30 = vmul.f32 %v336_v38, %v336_v38 }
  0x9f   :  { %v472_v46 = vsel %vm75_vm0, %v400_v30, 0.0  ;;  %v339_v31 = vsub.f32 %v1300_v12, %v275_v39  ;;  %v338_v62 = vsub.f32 %v1305_v13, %v274_v47  ;;  %v475_v9 = vsel %vm75_vm0, %v401_v6, 0.0 }
  0xa0   :  { %470 = vadd.xlane.f32.xlu1 %v469_v5  ;;  %v105_v8 = vpop.xlane.xlu1 %104  ;;  %473 = vadd.xlane.f32.xlu0 %v472_v46  ;;  %v102_v63 = vpop.xlane.xlu0 %101 }
  0xa1   :  { %v277_v14 = vmul.f32 0.03125, %v105_v8  ;;  %v276_v15 = vmul.f32 0.03125, %v102_v63  ;;  %v403_v0 = vmul.f32 %v339_v31, %v339_v31  ;;  %v402_v55 = vmul.f32 %v338_v62, %v338_v62 }
  0xa3   :  { %v478_v1 = vsel %vm75_vm0, %v402_v55, 0.0  ;;  %v341_v54 = vsub.f32 %v1314_v16, %v277_v14  ;;  %v340_v23 = vsub.f32 %v1319_v17, %v276_v15  ;;  %v481_v13 = vsel %vm75_vm0, %v403_v0, 0.0 }
  0xa4   :  { %476 = vadd.xlane.f32.xlu1 %v475_v9  ;;  %v111_v12 = vpop.xlane.xlu1 %110  ;;  %479 = vadd.xlane.f32.xlu0 %v478_v1  ;;  %v108_v22 = vpop.xlane.xlu0 %107 }
  0xa5   :  { %v279_v38 = vmul.f32 0.03125, %v111_v12  ;;  %v278_v2 = vmul.f32 0.03125, %v108_v22  ;;  %v405_v5 = vmul.f32 %v341_v54, %v341_v54  ;;  %v404_v7 = vmul.f32 %v340_v23, %v340_v23 }
  0xa7   :  { %v484_v39 = vsel %vm75_vm0, %v404_v7, 0.0  ;;  %v343_v47 = vsub.f32 %v1328_v20, %v279_v38  ;;  %v342_v6 = vsub.f32 %v1333_v21, %v278_v2  ;;  %v487_v17 = vsel %vm75_vm0, %v405_v5, 0.0 }
  0xa8   :  { %482 = vadd.xlane.f32.xlu1 %v481_v13  ;;  %v117_v16 = vpop.xlane.xlu1 %116  ;;  %485 = vadd.xlane.f32.xlu0 %v484_v39  ;;  %v114_v30 = vpop.xlane.xlu0 %113 }
  0xa9   :  { %v281_v46 = vmul.f32 0.03125, %v117_v16  ;;  %v280_v31 = vmul.f32 0.03125, %v114_v30  ;;  %v407_v62 = vmul.f32 %v343_v47, %v343_v47  ;;  %v406_v8 = vmul.f32 %v342_v6, %v342_v6 }
  0xab   :  { %v490_v9 = vsel %vm75_vm0, %v406_v8, 0.0  ;;  %v345_v63 = vsub.f32 %v1342_v24, %v281_v46  ;;  %v344_v14 = vsub.f32 %v1347_v25, %v280_v31  ;;  %v493_v21 = vsel %vm75_vm0, %v407_v62, 0.0 }
  0xac   :  { %488 = vadd.xlane.f32.xlu1 %v487_v17  ;;  %v123_v20 = vpop.xlane.xlu1 %122  ;;  %491 = vadd.xlane.f32.xlu0 %v490_v9  ;;  %v120_v15 = vpop.xlane.xlu0 %119 }
  0xad   :  { %v283_v0 = vmul.f32 0.03125, %v123_v20  ;;  %v282_v55 = vmul.f32 0.03125, %v120_v15  ;;  %v409_v1 = vmul.f32 %v345_v63, %v345_v63  ;;  %v408_v54 = vmul.f32 %v344_v14, %v344_v14 }
  0xaf   :  { %v496_v23 = vsel %vm75_vm0, %v408_v54, 0.0  ;;  %v347_v12 = vsub.f32 %v1356_v28, %v283_v0  ;;  %v346_v13 = vsub.f32 %v1361_v29, %v282_v55  ;;  %v499_v25 = vsel %vm75_vm0, %v409_v1, 0.0 }
  0xb0   :  { %494 = vadd.xlane.f32.xlu1 %v493_v21  ;;  %v129_v24 = vpop.xlane.xlu1 %128  ;;  %497 = vadd.xlane.f32.xlu0 %v496_v23  ;;  %v126_v22 = vpop.xlane.xlu0 %125 }
  0xb1   :  { %v285_v38 = vmul.f32 0.03125, %v129_v24  ;;  %v284_v2 = vmul.f32 0.03125, %v126_v22  ;;  %v411_v5 = vmul.f32 %v347_v12, %v347_v12  ;;  %v410_v7 = vmul.f32 %v346_v13, %v346_v13 }
  0xb3   :  { %v502_v39 = vsel %vm75_vm0, %v410_v7, 0.0  ;;  %v349_v47 = vsub.f32 %v1370_v32, %v285_v38  ;;  %v348_v6 = vsub.f32 %v1375_v33, %v284_v2  ;;  %v505_v29 = vsel %vm75_vm0, %v411_v5, 0.0 }
  0xb4   :  { %500 = vadd.xlane.f32.xlu1 %v499_v25  ;;  %v135_v28 = vpop.xlane.xlu1 %134  ;;  %503 = vadd.xlane.f32.xlu0 %v502_v39  ;;  %v132_v16 = vpop.xlane.xlu0 %131 }
  0xb5   :  { %v287_v17 = vmul.f32 0.03125, %v135_v28  ;;  %v286_v30 = vmul.f32 0.03125, %v132_v16  ;;  %v413_v46 = vmul.f32 %v349_v47, %v349_v47  ;;  %v412_v31 = vmul.f32 %v348_v6, %v348_v6 }
  0xb7   :  { %v508_v62 = vsel %vm75_vm0, %v412_v31, 0.0  ;;  %v351_v8 = vsub.f32 %v1384_v36, %v287_v17  ;;  %v350_v9 = vsub.f32 %v1389_v37, %v286_v30  ;;  %v511_v33 = vsel %vm75_vm0, %v413_v46, 0.0 }
  0xb8   :  { %506 = vadd.xlane.f32.xlu1 %v505_v29  ;;  %v141_v32 = vpop.xlane.xlu1 %140  ;;  %509 = vadd.xlane.f32.xlu0 %v508_v62  ;;  %v138_v63 = vpop.xlane.xlu0 %137 }
  0xb9   :  { %v289_v14 = vmul.f32 0.03125, %v141_v32  ;;  %v288_v20 = vmul.f32 0.03125, %v138_v63  ;;  %v415_v21 = vmul.f32 %v351_v8, %v351_v8  ;;  %v414_v15 = vmul.f32 %v350_v9, %v350_v9 }
  0xbb   :  { %v514_v0 = vsel %vm75_vm0, %v414_v15, 0.0  ;;  %v353_v55 = vsub.f32 %v1398_v40, %v289_v14  ;;  %v352_v1 = vsub.f32 %v1403_v41, %v288_v20  ;;  %v517_v37 = vsel %vm75_vm0, %v415_v21, 0.0 }
  0xbc   :  { %512 = vadd.xlane.f32.xlu1 %v511_v33  ;;  %v147_v36 = vpop.xlane.xlu1 %146  ;;  %515 = vadd.xlane.f32.xlu0 %v514_v0  ;;  %v144_v54 = vpop.xlane.xlu0 %143 }
  0xbd   :  { %v291_v23 = vmul.f32 0.03125, %v147_v36  ;;  %v290_v12 = vmul.f32 0.03125, %v144_v54  ;;  %v417_v13 = vmul.f32 %v353_v55, %v353_v55  ;;  %v416_v24 = vmul.f32 %v352_v1, %v352_v1 }
  0xbf   :  { %v520_v25 = vsel %vm75_vm0, %v416_v24, 0.0  ;;  %v355_v22 = vsub.f32 %v1412_v44, %v291_v23  ;;  %v354_v38 = vsub.f32 %v1417_v45, %v290_v12  ;;  %v523_v41 = vsel %vm75_vm0, %v417_v13, 0.0 }
  0xc0   :  { %518 = vadd.xlane.f32.xlu1 %v517_v37  ;;  %v153_v40 = vpop.xlane.xlu1 %152  ;;  %521 = vadd.xlane.f32.xlu0 %v520_v25  ;;  %v150_v2 = vpop.xlane.xlu0 %149 }
  0xc1   :  { %v293_v5 = vmul.f32 0.03125, %v153_v40  ;;  %v292_v7 = vmul.f32 0.03125, %v150_v2  ;;  %v419_v39 = vmul.f32 %v355_v22, %v355_v22  ;;  %v418_v47 = vmul.f32 %v354_v38, %v354_v38 }
  0xc3   :  { %v526_v6 = vsel %vm75_vm0, %v418_v47, 0.0  ;;  %v357_v28 = vsub.f32 %v1426_v48, %v293_v5  ;;  %v356_v29 = vsub.f32 %v1431_v49, %v292_v7  ;;  %v529_v45 = vsel %vm75_vm0, %v419_v39, 0.0 }
  0xc4   :  { %524 = vadd.xlane.f32.xlu1 %v523_v41  ;;  %v159_v44 = vpop.xlane.xlu1 %158  ;;  %527 = vadd.xlane.f32.xlu0 %v526_v6  ;;  %v156_v16 = vpop.xlane.xlu0 %155 }
  0xc5   :  { %v295_v17 = vmul.f32 0.03125, %v159_v44  ;;  %v294_v30 = vmul.f32 0.03125, %v156_v16  ;;  %v421_v46 = vmul.f32 %v357_v28, %v357_v28  ;;  %v420_v31 = vmul.f32 %v356_v29, %v356_v29 }
  0xc7   :  { %v532_v62 = vsel %vm75_vm0, %v420_v31, 0.0  ;;  %v359_v8 = vsub.f32 %v1440_v52, %v295_v17  ;;  %v358_v9 = vsub.f32 %v1445_v53, %v294_v30  ;;  %v535_v49 = vsel %vm75_vm0, %v421_v46, 0.0 }
  0xc8   :  { %530 = vadd.xlane.f32.xlu1 %v529_v45  ;;  %v165_v48 = vpop.xlane.xlu1 %164  ;;  %533 = vadd.xlane.f32.xlu0 %v532_v62  ;;  %v162_v32 = vpop.xlane.xlu0 %161 }
  0xc9   :  { %v297_v33 = vmul.f32 0.03125, %v165_v48  ;;  %v296_v63 = vmul.f32 0.03125, %v162_v32  ;;  %v423_v14 = vmul.f32 %v359_v8, %v359_v8  ;;  %v422_v20 = vmul.f32 %v358_v9, %v358_v9 }
  0xcb   :  { %v538_v21 = vsel %vm75_vm0, %v422_v20, 0.0  ;;  %v361_v15 = vsub.f32 %v1454_v56, %v297_v33  ;;  %v360_v0 = vsub.f32 %v1459_v57, %v296_v63  ;;  %v541_v53 = vsel %vm75_vm0, %v423_v14, 0.0 }
  0xcc   :  { %536 = vadd.xlane.f32.xlu1 %v535_v49  ;;  %v171_v52 = vpop.xlane.xlu1 %170  ;;  %539 = vadd.xlane.f32.xlu0 %v538_v21  ;;  %v168_v55 = vpop.xlane.xlu0 %167 }
  0xcd   :  { %v299_v1 = vmul.f32 0.03125, %v171_v52  ;;  %v298_v36 = vmul.f32 0.03125, %v168_v55  ;;  %v425_v37 = vmul.f32 %v361_v15, %v361_v15  ;;  %v424_v54 = vmul.f32 %v360_v0, %v360_v0 }
  0xcf   :  { %v363_v23 = vsub.f32 %v1468_v60, %v299_v1  ;;  %v362_v12 = vsub.f32 %v1473_v61, %v298_v36  ;;  %v544_v13 = vsel %vm75_vm0, %v424_v54, 0.0  ;;  %v547_v57 = vsel %vm75_vm0, %v425_v37, 0.0 }
  0xd0   :  { %542 = vadd.xlane.f32.xlu1 %v541_v53  ;;  %v177_v56 = vpop.xlane.xlu1 %176  ;;  %545 = vadd.xlane.f32.xlu0 %v544_v13  ;;  %v174_v24 = vpop.xlane.xlu0 %173 }
  0xd1   :  { %v301_v25 = vmul.f32 0.03125, %v177_v56  ;;  %v300_v22 = vmul.f32 0.03125, %v174_v24  ;;  %v427_v38 = vmul.f32 %v363_v23, %v363_v23  ;;  %v426_v40 = vmul.f32 %v362_v12, %v362_v12 }
  0xd3   :  { %v365_v41 = vsub.f32 %v1482_v3, %v301_v25  ;;  %v364_v2 = vsub.f32 %v1487_v4, %v300_v22  ;;  %v550_v60 = vsel %vm75_vm0, %v426_v40, 0.0  ;;  %v553_v5 = vsel %vm75_vm0, %v427_v38, 0.0 }
  0xd4   :  { %548 = vadd.xlane.f32.xlu1 %v547_v57  ;;  %v183_v61 = vpop.xlane.xlu1 %182  ;;  %551 = vadd.xlane.f32.xlu0 %v550_v60  ;;  %v180_v7 = vpop.xlane.xlu0 %179 }
  0xd5   :  { %v303_v39 = vmul.f32 0.03125, %v183_v61  ;;  %v302_v47 = vmul.f32 0.03125, %v180_v7  ;;  %v429_v6 = vmul.f32 %v365_v41, %v365_v41  ;;  %v428_v28 = vmul.f32 %v364_v2, %v364_v2 }
  0xd7   :  { %v367_v29 = vsub.f32 %v1496_v10, %v303_v39  ;;  %v366_v44 = vsub.f32 %v1501_v11, %v302_v47  ;;  %v556_v3 = vsel %vm75_vm0, %v428_v28, 0.0  ;;  %v559_v45 = vsel %vm75_vm0, %v429_v6, 0.0 }
  0xd8   :  { %554 = vadd.xlane.f32.xlu1 %v553_v5  ;;  %v189_v4 = vpop.xlane.xlu1 %188  ;;  %557 = vadd.xlane.f32.xlu0 %v556_v3  ;;  %v186_v16 = vpop.xlane.xlu0 %185 }
  0xd9   :  { %v431_v17 = vmul.f32 %v367_v29, %v367_v29  ;;  %v430_v30 = vmul.f32 %v366_v44, %v366_v44  ;;  %v305_v46 = vmul.f32 0.03125, %v189_v4  ;;  %v304_v31 = vmul.f32 0.03125, %v186_v16 }
  0xdb   :  { %v369_v62 = vsub.f32 %v1510_v18, %v305_v46  ;;  %v368_v8 = vsub.f32 %v1515_v19, %v304_v31  ;;  %v562_v10 = vsel %vm75_vm0, %v430_v30, 0.0  ;;  %v565_v9 = vsel %vm75_vm0, %v431_v17, 0.0  ;;  %v2383_v46 = vld [vmem:[#allocation2_spill] sm:$0xff] }
  0xdc   :  { %560 = vadd.xlane.f32.xlu1 %v559_v45  ;;  %v195_v11 = vpop.xlane.xlu1 %194  ;;  %563 = vadd.xlane.f32.xlu0 %v562_v10  ;;  %v192_v48 = vpop.xlane.xlu0 %191 }
  0xdd   :  { %v433_v49 = vmul.f32 %v369_v62, %v369_v62  ;;  %v432_v32 = vmul.f32 %v368_v8, %v368_v8  ;;  %v307_v33 = vmul.f32 0.03125, %v195_v11  ;;  %v306_v63 = vmul.f32 0.03125, %v192_v48  ;;  %v2384_v62 = vld [vmem:[#allocation3_spill] sm:$0xff] }
  0xdf   :  { %v371_v14 = vsub.f32 %v1524_v26, %v307_v33  ;;  %v370_v20 = vsub.f32 %v1529_v27, %v306_v63  ;;  %v568_v18 = vsel %vm75_vm0, %v432_v32, 0.0  ;;  %v571_v21 = vsel %vm75_vm0, %v433_v49, 0.0  ;;  %v2385_v33 = vld [vmem:[#allocation4_spill] sm:$0xff] }
  0xe0   :  { %566 = vadd.xlane.f32.xlu1 %v565_v9  ;;  %v201_v19 = vpop.xlane.xlu1 %200  ;;  %569 = vadd.xlane.f32.xlu0 %v568_v18  ;;  %v198_v15 = vpop.xlane.xlu0 %197 }
  0xe1   :  { %v435_v0 = vmul.f32 %v371_v14, %v371_v14  ;;  %v434_v52 = vmul.f32 %v370_v20, %v370_v20  ;;  %v309_v53 = vmul.f32 0.03125, %v201_v19  ;;  %v308_v55 = vmul.f32 0.03125, %v198_v15  ;;  %v2386_v14 = vld [vmem:[#allocation5_spill] sm:$0xff] }
  0xe3   :  { %v373_v1 = vsub.f32 %v1538_v34, %v309_v53  ;;  %v372_v36 = vsub.f32 %v1543_v35, %v308_v55  ;;  %v574_v26 = vsel %vm75_vm0, %v434_v52, 0.0  ;;  %v577_v37 = vsel %vm75_vm0, %v435_v0, 0.0 }
  0xe4   :  { %572 = vadd.xlane.f32.xlu1 %v571_v21  ;;  %v207_v27 = vpop.xlane.xlu1 %206  ;;  %575 = vadd.xlane.f32.xlu0 %v574_v26  ;;  %v204_v54 = vpop.xlane.xlu0 %203  ;;  %v2388_v26 = vld [vmem:[#allocation7_spill] sm:$0xff] }
  0xe5   :  { %v437_v23 = vmul.f32 %v373_v1, %v373_v1  ;;  %v436_v12 = vmul.f32 %v372_v36, %v372_v36  ;;  %v311_v13 = vmul.f32 0.03125, %v207_v27  ;;  %v310_v56 = vmul.f32 0.03125, %v204_v54  ;;  %v2387_v1 = vld [vmem:[#allocation6_spill] sm:$0xff] }
  0xe7   :  { %v375_v57 = vsub.f32 %v1552_v42, %v311_v13  ;;  %v374_v24 = vsub.f32 %v1557_v43, %v310_v56  ;;  %v580_v34 = vsel %vm75_vm0, %v436_v12, 0.0  ;;  %v583_v25 = vsel %vm75_vm0, %v437_v23, 0.0 }
  0xe8   :  { %578 = vadd.xlane.f32.xlu1 %v577_v37  ;;  %v213_v35 = vpop.xlane.xlu1 %212  ;;  %581 = vadd.xlane.f32.xlu0 %v580_v34  ;;  %v210_v22 = vpop.xlane.xlu0 %209  ;;  %v2389_v34 = vld [vmem:[#allocation8_spill] sm:$0xff] }
  0xe9   :  { %v439_v38 = vmul.f32 %v375_v57, %v375_v57  ;;  %v438_v40 = vmul.f32 %v374_v24, %v374_v24  ;;  %v313_v41 = vmul.f32 0.03125, %v213_v35  ;;  %v312_v2 = vmul.f32 0.03125, %v210_v22 }
  0xeb   :  { %v377_v60 = vsub.f32 %v1566_v50, %v313_v41  ;;  %v376_v61 = vsub.f32 %v1571_v51, %v312_v2  ;;  %v586_v42 = vsel %vm75_vm0, %v438_v40, 0.0  ;;  %v589_v5 = vsel %vm75_vm0, %v439_v38, 0.0 }
  0xec   :  { %584 = vadd.xlane.f32.xlu1 %v583_v25  ;;  %v219_v43 = vpop.xlane.xlu1 %218  ;;  %587 = vadd.xlane.f32.xlu0 %v586_v42  ;;  %v216_v7 = vpop.xlane.xlu0 %215  ;;  %v2390_v25 = vld [vmem:[#allocation9_spill] sm:$0xff] }
  0xed   :  { %v441_v39 = vmul.f32 %v377_v60, %v377_v60  ;;  %v440_v47 = vmul.f32 %v376_v61, %v376_v61  ;;  %v315_v6 = vmul.f32 0.03125, %v219_v43  ;;  %v314_v28 = vmul.f32 0.03125, %v216_v7 }
  0xef   :  { %v379_v29 = vsub.f32 %v1580_v58, %v315_v6  ;;  %v378_v44 = vsub.f32 %v1585_v59, %v314_v28  ;;  %v592_v50 = vsel %vm75_vm0, %v440_v47, 0.0  ;;  %v595_v3 = vsel %vm75_vm0, %v441_v39, 0.0  ;;  %v2392_v39 = vld [vmem:[#allocation11_spill] sm:$0xff] }
  0xf0   :  { %590 = vadd.xlane.f32.xlu1 %v589_v5  ;;  %v225_v51 = vpop.xlane.xlu1 %224  ;;  %593 = vadd.xlane.f32.xlu0 %v592_v50  ;;  %v222_v4 = vpop.xlane.xlu0 %221  ;;  %v2391_v5 = vld [vmem:[#allocation10_spill] sm:$0xff] }
  0xf1   :  { %v443_v45 = vmul.f32 %v379_v29, %v379_v29  ;;  %v442_v16 = vmul.f32 %v378_v44, %v378_v44  ;;  %v317_v17 = vmul.f32 0.03125, %v225_v51  ;;  %v316_v30 = vmul.f32 0.03125, %v222_v4 }
  0xf3   :  { %v381_v31 = vsub.f32 %v2383_v46, %v317_v17  ;;  %v380_v8 = vsub.f32 %v2384_v62, %v316_v30  ;;  %v598_v58 = vsel %vm75_vm0, %v442_v16, 0.0  ;;  %v601_v10 = vsel %vm75_vm0, %v443_v45, 0.0  ;;  %v2393_v45 = vld [vmem:[#allocation12_spill] sm:$0xff]  ;;  %v2394_v17 = vld [vmem:[#allocation13_spill] sm:$0xff] }
  0xf4   :  { %596 = vadd.xlane.f32.xlu1 %v595_v3  ;;  %v231_v59 = vpop.xlane.xlu1 %230  ;;  %599 = vadd.xlane.f32.xlu0 %v598_v58  ;;  %v228_v11 = vpop.xlane.xlu0 %227 }
  0xf5   :  { %v445_v9 = vmul.f32 %v381_v31, %v381_v31  ;;  %v444_v48 = vmul.f32 %v380_v8, %v380_v8  ;;  %v319_v49 = vmul.f32 0.03125, %v231_v59  ;;  %v318_v32 = vmul.f32 0.03125, %v228_v11 }
  0xf7   :  { %v383_v63 = vsub.f32 %v2385_v33, %v319_v49  ;;  %v382_v20 = vsub.f32 %v2386_v14, %v318_v32  ;;  %v604_v18 = vsel %vm75_vm0, %v444_v48, 0.0  ;;  %v607_v21 = vsel %vm75_vm0, %v445_v9, 0.0  ;;  %v2395_v9 = vld [vmem:[#allocation14_spill] sm:$0xff]  ;;  %v2396_v49 = vld [vmem:[#allocation15_spill] sm:$0xff] }
  0xf8   :  { %602 = vadd.xlane.f32.xlu1 %v601_v10  ;;  %v237_v19 = vpop.xlane.xlu1 %236  ;;  %605 = vadd.xlane.f32.xlu0 %v604_v18  ;;  %v234_v15 = vpop.xlane.xlu0 %233 }
  0xf9   :  { %v447_v0 = vmul.f32 %v383_v63, %v383_v63  ;;  %v446_v52 = vmul.f32 %v382_v20, %v382_v20  ;;  %v321_v53 = vmul.f32 0.03125, %v237_v19  ;;  %v320_v55 = vmul.f32 0.03125, %v234_v15 }
  0xfb   :  { %v385_v36 = vsub.f32 %v2387_v1, %v321_v53  ;;  %v384_v27 = vsub.f32 %v2388_v26, %v320_v55  ;;  %v610_v37 = vsel %vm75_vm0, %v446_v52, 0.0  ;;  %v613_v23 = vsel %vm75_vm0, %v447_v0, 0.0  ;;  %v2397_v0 = vld [vmem:[#allocation16_spill] sm:$0xff]  ;;  %v2398_v53 = vld [vmem:[#allocation17_spill] sm:$0xff] }
  0xfc   :  { %608 = vadd.xlane.f32.xlu1 %v607_v21  ;;  %v243_v54 = vpop.xlane.xlu1 %242  ;;  %611 = vadd.xlane.f32.xlu0 %v610_v37  ;;  %v240_v12 = vpop.xlane.xlu0 %239 }
  0xfd   :  { %v449_v13 = vmul.f32 %v385_v36, %v385_v36  ;;  %v448_v56 = vmul.f32 %v384_v27, %v384_v27  ;;  %v323_v57 = vmul.f32 0.03125, %v243_v54  ;;  %v322_v24 = vmul.f32 0.03125, %v240_v12 }
  0xff   :  { %v387_v35 = vsub.f32 %v2389_v34, %v323_v57  ;;  %v386_v22 = vsub.f32 %v2390_v25, %v322_v24  ;;  %v616_v38 = vsel %vm75_vm0, %v448_v56, 0.0  ;;  %v619_v41 = vsel %vm75_vm0, %v449_v13, 0.0 }
 0x100   :  { %614 = vadd.xlane.f32.xlu1 %v613_v23  ;;  %v249_v40 = vpop.xlane.xlu1 %248  ;;  %617 = vadd.xlane.f32.xlu0 %v616_v38  ;;  %v246_v2 = vpop.xlane.xlu0 %245 }
 0x101   :  { %v451_v60 = vmul.f32 %v387_v35, %v387_v35  ;;  %v450_v61 = vmul.f32 %v386_v22, %v386_v22  ;;  %v325_v42 = vmul.f32 0.03125, %v249_v40  ;;  %v324_v43 = vmul.f32 0.03125, %v246_v2 }
 0x103   :  { %v389_v7 = vsub.f32 %v2391_v5, %v325_v42  ;;  %v388_v47 = vsub.f32 %v2392_v39, %v324_v43  ;;  %v622_v6 = vsel %vm75_vm0, %v450_v61, 0.0  ;;  %v625_v29 = vsel %vm75_vm0, %v451_v60, 0.0  ;;  %v1834_v39 = vld [vmem:[%s2349_s1] ss:$0 sm:$0xff] }
 0x104   :  { %620 = vadd.xlane.f32.xlu1 %v619_v41  ;;  %v255_v28 = vpop.xlane.xlu1 %254  ;;  %623 = vadd.xlane.f32.xlu0 %v622_v6  ;;  %v252_v44 = vpop.xlane.xlu0 %251 }
 0x105   :  { %v453_v50 = vmul.f32 %v389_v7, %v389_v7  ;;  %v452_v51 = vmul.f32 %v388_v47, %v388_v47  ;;  %v327_v3 = vmul.f32 0.03125, %v255_v28  ;;  %v326_v4 = vmul.f32 0.03125, %v252_v44  ;;  %v1176_v28 = vld [vmem:[%s2348_s0] sm:$0xff] }
 0x107   :  { %v391_v16 = vsub.f32 %v2393_v45, %v327_v3  ;;  %v390_v30 = vsub.f32 %v2394_v17, %v326_v4  ;;  %v628_v46 = vsel %vm75_vm0, %v452_v51, 0.0  ;;  %v631_v62 = vsel %vm75_vm0, %v453_v50, 0.0 }
 0x108   :  { %626 = vadd.xlane.f32.xlu1 %v625_v29  ;;  %v261_v31 = vpop.xlane.xlu1 %260  ;;  %629 = vadd.xlane.f32.xlu0 %v628_v46  ;;  %v258_v8 = vpop.xlane.xlu0 %257  ;;  %v1177_v46 = vld [vmem:[%s2348_s0 + $0x8] sm:$0xff] }
 0x109   :  { %v455_v58 = vmul.f32 %v391_v16, %v391_v16  ;;  %v454_v59 = vmul.f32 %v390_v30, %v390_v30  ;;  %v329_v10 = vmul.f32 0.03125, %v261_v31  ;;  %v328_v11 = vmul.f32 0.03125, %v258_v8 }
 0x10b   :  { %v393_v48 = vsub.f32 %v2395_v9, %v329_v10  ;;  %v392_v32 = vsub.f32 %v2396_v49, %v328_v11  ;;  %v634_v33 = vsel %vm75_vm0, %v454_v59, 0.0  ;;  %v637_v14 = vsel %vm75_vm0, %v455_v58, 0.0  ;;  %v1178_v58 = vld [vmem:[%s2348_s0 + $0x10] sm:$0xff] }
 0x10c   :  { %632 = vadd.xlane.f32.xlu1 %v631_v62  ;;  %v267_v63 = vpop.xlane.xlu1 %266  ;;  %635 = vadd.xlane.f32.xlu0 %v634_v33  ;;  %v264_v20 = vpop.xlane.xlu0 %263 }
 0x10d   :  { %v457_v18 = vmul.f32 %v393_v48, %v393_v48  ;;  %v456_v19 = vmul.f32 %v392_v32, %v392_v32  ;;  %v331_v21 = vmul.f32 0.03125, %v267_v63  ;;  %v330_v15 = vmul.f32 0.03125, %v264_v20 }
 0x10f   :  { %v395_v52 = vsub.f32 %v2397_v0, %v331_v21  ;;  %v394_v55 = vsub.f32 %v2398_v53, %v330_v15  ;;  %v640_v1 = vsel %vm75_vm0, %v456_v19, 0.0  ;;  %v643_v27 = vsel %vm75_vm0, %v457_v18, 0.0  ;;  %v1180_v21 = vld [vmem:[%s2348_s0 + $0x20] sm:$0xff] }
 0x110   :  { %638 = vadd.xlane.f32.xlu1 %v637_v14  ;;  %641 = vadd.xlane.f32.xlu0 %v640_v1  ;;  %v1179_v14 = vld [vmem:[%s2348_s0 + $0x18] sm:$0xff] }
 0x111   :  { %v459_v36 = vmul.f32 %v395_v52, %v395_v52  ;;  %v458_v26 = vmul.f32 %v394_v55, %v394_v55 }
 0x113   :  { %v646_v37 = vsel %vm75_vm0, %v458_v26, 0.0  ;;  %v649_v54 = vsel %vm75_vm0, %v459_v36, 0.0 }
 0x114   :  { %644 = vadd.xlane.f32.xlu1 %v643_v27  ;;  %647 = vadd.xlane.f32.xlu0 %v646_v37  ;;  %v1181_v37 = vld [vmem:[%s2348_s0 + $0x28] sm:$0xff] }
 0x118   :  { %650 = vadd.xlane.f32.xlu1 %v649_v54 }
 0x125   :  { %v462_v23 = vpop.xlane.xlu0 %461 }
 0x126   :  { %v652_v12 = vmul.f32 0.03125, %v462_v23 }
 0x128   :  { %v716_v13 = vadd.f32 1e-05, %v652_v12 }
 0x129   :  { %v465_v56 = vpop.xlane.xlu1 %464  ;;  %v468_v57 = vpop.xlane.xlu0 %467 }
 0x12a   :  { %1048 = vrsqrt.f32 %v716_v13  ;;  %v653_v24 = vmul.f32 0.03125, %v465_v56  ;;  %v654_v34 = vmul.f32 0.03125, %v468_v57  ;;  %v1182_v13 = vld [vmem:[%s2348_s0 + $0x30] sm:$0xff] }
 0x12c   :  { %v717_v35 = vadd.f32 1e-05, %v653_v24  ;;  %v718_v25 = vadd.f32 1e-05, %v654_v34 }
 0x12d   :  { %v471_v22 = vpop.xlane.xlu1 %470  ;;  %v474_v38 = vpop.xlane.xlu0 %473 }
 0x12e   :  { %1050 = vrsqrt.f32 %v717_v35  ;;  %v655_v40 = vmul.f32 0.03125, %v471_v22  ;;  %v656_v41 = vmul.f32 0.03125, %v474_v38 }
 0x12f   :  { %1052 = vrsqrt.f32 %v718_v25 }
 0x130   :  { %v719_v2 = vadd.f32 1e-05, %v655_v40  ;;  %v720_v60 = vadd.f32 1e-05, %v656_v41  ;;  %v1183_v41 = vld [vmem:[%s2348_s0 + $0x38] sm:$0xff] }
 0x131   :  { %v477_v61 = vpop.xlane.xlu1 %476  ;;  %v480_v42 = vpop.xlane.xlu0 %479 }
 0x132   :  { %1054 = vrsqrt.f32 %v719_v2  ;;  %v657_v43 = vmul.f32 0.03125, %v477_v61  ;;  %v658_v5 = vmul.f32 0.03125, %v480_v42  ;;  %v1184_v42 = vld [vmem:[%s2348_s0 + $0x40] sm:$0xff] }
 0x133   :  { %1056 = vrsqrt.f32 %v720_v60 }
 0x134   :  { %v1049_v7 = vpop.eup %1048  ;;  %v721_v47 = vadd.f32 1e-05, %v657_v43  ;;  %v722_v6 = vadd.f32 1e-05, %v658_v5 }
 0x135   :  { %v845_v29 = vmul.f32 %v1176_v28, %v1049_v7  ;;  %v483_v44 = vpop.xlane.xlu1 %482  ;;  %v486_v50 = vpop.xlane.xlu0 %485 }
 0x136   :  { %1058 = vrsqrt.f32 %v721_v47  ;;  %v659_v51 = vmul.f32 0.03125, %v483_v44  ;;  %v660_v3 = vmul.f32 0.03125, %v486_v50 }
 0x137   :  { %v915_v4 = vmul.f32 %v1834_v39, %v845_v29  ;;  %1060 = vrsqrt.f32 %v722_v6 }
 0x138   :  { %v1051_v45 = vpop.eup %1050  ;;  %v723_v16 = vadd.f32 1e-05, %v659_v51  ;;  %v724_v17 = vadd.f32 1e-05, %v660_v3  ;;  %v1185_v51 = vld [vmem:[%s2348_s0 + $0x48] sm:$0xff] }
 0x139   :  { %v1053_v30 = vpop.eup %1052  ;;  %979 = vst.msk [vmem:[%s2350_s2] sm:$0xff] %vm75_vm0, %v915_v4  ;;  %v846_v31 = vmul.f32 %v1177_v46, %v1051_v45  ;;  %v489_v62 = vpop.xlane.xlu1 %488 }
 0x13a   :  { %v492_v8 = vpop.xlane.xlu0 %491  ;;  %v847_v59 = vmul.f32 %v1178_v58, %v1053_v30  ;;  %1062 = vrsqrt.f32 %v723_v16  ;;  %v661_v10 = vmul.f32 0.03125, %v489_v62  ;;  %v1186_v16 = vld [vmem:[%s2348_s0 + $0x50] sm:$0xff] }
 0x13b   :  { %v662_v11 = vmul.f32 0.03125, %v492_v8  ;;  %v916_v9 = vmul.f32 %v1834_v39, %v846_v31  ;;  %1064 = vrsqrt.f32 %v724_v17 }
 0x13c   :  { %v1055_v48 = vpop.eup %1054  ;;  %v917_v49 = vmul.f32 %v1834_v39, %v847_v59  ;;  %v725_v32 = vadd.f32 1e-05, %v661_v10 }
 0x13d   :  { %v726_v33 = vadd.f32 1e-05, %v662_v11  ;;  %v1057_v63 = vpop.eup %1056  ;;  %980 = vst.msk [vmem:[%s2350_s2 + $0x8] sm:$0xff] %vm75_vm0, %v916_v9  ;;  %v848_v20 = vmul.f32 %v1179_v14, %v1055_v48  ;;  %v495_v18 = vpop.xlane.xlu1 %494  ;;  %v1187_v11 = vld [vmem:[%s2348_s0 + $0x58] sm:$0xff] }
 0x13e   :  { %v498_v19 = vpop.xlane.xlu0 %497  ;;  %981 = vst.msk [vmem:[%s2350_s2 + $0x10] sm:$0xff] %vm75_vm0, %v917_v49  ;;  %v849_v15 = vmul.f32 %v1180_v21, %v1057_v63  ;;  %1066 = vrsqrt.f32 %v725_v32  ;;  %v663_v0 = vmul.f32 0.03125, %v495_v18  ;;  %v1188_v32 = vld [vmem:[%s2348_s0 + $0x60] sm:$0xff] }
 0x13f   :  { %v664_v52 = vmul.f32 0.03125, %v498_v19  ;;  %v918_v53 = vmul.f32 %v1834_v39, %v848_v20  ;;  %1068 = vrsqrt.f32 %v726_v33 }
 0x140   :  { %v1059_v55 = vpop.eup %1058  ;;  %v919_v1 = vmul.f32 %v1834_v39, %v849_v15  ;;  %v727_v36 = vadd.f32 1e-05, %v663_v0 }
 0x141   :  { %v728_v26 = vadd.f32 1e-05, %v664_v52  ;;  %v1061_v27 = vpop.eup %1060  ;;  %982 = vst.msk [vmem:[%s2350_s2 + $0x18] sm:$0xff] %vm75_vm0, %v918_v53  ;;  %v850_v54 = vmul.f32 %v1181_v37, %v1059_v55  ;;  %v501_v23 = vpop.xlane.xlu1 %500  ;;  %v1189_v52 = vld [vmem:[%s2348_s0 + $0x68] sm:$0xff] }
 0x142   :  { %v504_v12 = vpop.xlane.xlu0 %503  ;;  %983 = vst.msk [vmem:[%s2350_s2 + $0x20] sm:$0xff] %vm75_vm0, %v919_v1  ;;  %v851_v56 = vmul.f32 %v1182_v13, %v1061_v27  ;;  %1070 = vrsqrt.f32 %v727_v36  ;;  %v665_v57 = vmul.f32 0.03125, %v501_v23  ;;  %v1190_v36 = vld [vmem:[%s2348_s0 + $0x70] sm:$0xff] }
 0x143   :  { %v666_v24 = vmul.f32 0.03125, %v504_v12  ;;  %v920_v34 = vmul.f32 %v1834_v39, %v850_v54  ;;  %1072 = vrsqrt.f32 %v728_v26 }
 0x144   :  { %v1063_v35 = vpop.eup %1062  ;;  %v921_v25 = vmul.f32 %v1834_v39, %v851_v56  ;;  %v729_v22 = vadd.f32 1e-05, %v665_v57 }
 0x145   :  { %v730_v38 = vadd.f32 1e-05, %v666_v24  ;;  %v1065_v40 = vpop.eup %1064  ;;  %984 = vst.msk [vmem:[%s2350_s2 + $0x28] sm:$0xff] %vm75_vm0, %v920_v34  ;;  %v852_v2 = vmul.f32 %v1183_v41, %v1063_v35  ;;  %v507_v60 = vpop.xlane.xlu1 %506  ;;  %v1191_v24 = vld [vmem:[%s2348_s0 + $0x78] sm:$0xff] }
 0x146   :  { %v510_v61 = vpop.xlane.xlu0 %509  ;;  %985 = vst.msk [vmem:[%s2350_s2 + $0x30] sm:$0xff] %vm75_vm0, %v921_v25  ;;  %v853_v43 = vmul.f32 %v1184_v42, %v1065_v40  ;;  %1074 = vrsqrt.f32 %v729_v22  ;;  %v667_v5 = vmul.f32 0.03125, %v507_v60  ;;  %v1192_v22 = vld [vmem:[%s2348_s0 + $0x80] sm:$0xff] }
 0x147   :  { %v668_v7 = vmul.f32 0.03125, %v510_v61  ;;  %v922_v47 = vmul.f32 %v1834_v39, %v852_v2  ;;  %1076 = vrsqrt.f32 %v730_v38 }
 0x148   :  { %v1067_v6 = vpop.eup %1066  ;;  %v923_v28 = vmul.f32 %v1834_v39, %v853_v43  ;;  %v731_v29 = vadd.f32 1e-05, %v667_v5 }
 0x149   :  { %v732_v44 = vadd.f32 1e-05, %v668_v7  ;;  %v1069_v50 = vpop.eup %1068  ;;  %986 = vst.msk [vmem:[%s2350_s2 + $0x38] sm:$0xff] %vm75_vm0, %v922_v47  ;;  %v854_v3 = vmul.f32 %v1185_v51, %v1067_v6  ;;  %v513_v4 = vpop.xlane.xlu1 %512  ;;  %v1193_v7 = vld [vmem:[%s2348_s0 + $0x88] sm:$0xff] }
 0x14a   :  { %v516_v45 = vpop.xlane.xlu0 %515  ;;  %987 = vst.msk [vmem:[%s2350_s2 + $0x40] sm:$0xff] %vm75_vm0, %v923_v28  ;;  %v855_v17 = vmul.f32 %v1186_v16, %v1069_v50  ;;  %1078 = vrsqrt.f32 %v731_v29  ;;  %v669_v30 = vmul.f32 0.03125, %v513_v4  ;;  %v1194_v29 = vld [vmem:[%s2348_s0 + $0x90] sm:$0xff] }
 0x14b   :  { %v670_v46 = vmul.f32 0.03125, %v516_v45  ;;  %v924_v31 = vmul.f32 %v1834_v39, %v854_v3  ;;  %1080 = vrsqrt.f32 %v732_v44 }
 0x14c   :  { %v1071_v62 = vpop.eup %1070  ;;  %v925_v8 = vmul.f32 %v1834_v39, %v855_v17  ;;  %v733_v58 = vadd.f32 1e-05, %v669_v30 }
 0x14d   :  { %v734_v59 = vadd.f32 1e-05, %v670_v46  ;;  %v1073_v10 = vpop.eup %1072  ;;  %988 = vst.msk [vmem:[%s2350_s2 + $0x48] sm:$0xff] %vm75_vm0, %v924_v31  ;;  %v856_v9 = vmul.f32 %v1187_v11, %v1071_v62  ;;  %v519_v48 = vpop.xlane.xlu1 %518  ;;  %v1195_v46 = vld [vmem:[%s2348_s0 + $0x98] sm:$0xff] }
 0x14e   :  { %v522_v49 = vpop.xlane.xlu0 %521  ;;  %989 = vst.msk [vmem:[%s2350_s2 + $0x50] sm:$0xff] %vm75_vm0, %v925_v8  ;;  %v857_v33 = vmul.f32 %v1188_v32, %v1073_v10  ;;  %1082 = vrsqrt.f32 %v733_v58  ;;  %v671_v63 = vmul.f32 0.03125, %v519_v48  ;;  %v1196_v58 = vld [vmem:[%s2348_s0 + $0xa0] sm:$0xff] }
 0x14f   :  { %v672_v14 = vmul.f32 0.03125, %v522_v49  ;;  %v926_v20 = vmul.f32 %v1834_v39, %v856_v9  ;;  %1084 = vrsqrt.f32 %v734_v59 }
 0x150   :  { %v1075_v18 = vpop.eup %1074  ;;  %v927_v19 = vmul.f32 %v1834_v39, %v857_v33  ;;  %v735_v21 = vadd.f32 1e-05, %v671_v63 }
 0x151   :  { %v736_v15 = vadd.f32 1e-05, %v672_v14  ;;  %v1077_v0 = vpop.eup %1076  ;;  %990 = vst.msk [vmem:[%s2350_s2 + $0x58] sm:$0xff] %vm75_vm0, %v926_v20  ;;  %v858_v53 = vmul.f32 %v1189_v52, %v1075_v18  ;;  %v525_v55 = vpop.xlane.xlu1 %524  ;;  %v1197_v14 = vld [vmem:[%s2348_s0 + $0xa8] sm:$0xff] }
 0x152   :  { %v528_v1 = vpop.xlane.xlu0 %527  ;;  %991 = vst.msk [vmem:[%s2350_s2 + $0x60] sm:$0xff] %vm75_vm0, %v927_v19  ;;  %v859_v26 = vmul.f32 %v1190_v36, %v1077_v0  ;;  %1086 = vrsqrt.f32 %v735_v21  ;;  %v673_v27 = vmul.f32 0.03125, %v525_v55  ;;  %v1198_v21 = vld [vmem:[%s2348_s0 + $0xb0] sm:$0xff] }
 0x153   :  { %v674_v37 = vmul.f32 0.03125, %v528_v1  ;;  %v928_v54 = vmul.f32 %v1834_v39, %v858_v53  ;;  %1088 = vrsqrt.f32 %v736_v15 }
 0x154   :  { %v1079_v23 = vpop.eup %1078  ;;  %v929_v12 = vmul.f32 %v1834_v39, %v859_v26  ;;  %v737_v13 = vadd.f32 1e-05, %v673_v27 }
 0x155   :  { %v738_v56 = vadd.f32 1e-05, %v674_v37  ;;  %v1081_v57 = vpop.eup %1080  ;;  %992 = vst.msk [vmem:[%s2350_s2 + $0x68] sm:$0xff] %vm75_vm0, %v928_v54  ;;  %v860_v34 = vmul.f32 %v1191_v24, %v1079_v23  ;;  %v531_v35 = vpop.xlane.xlu1 %530  ;;  %v1199_v37 = vld [vmem:[%s2348_s0 + $0xb8] sm:$0xff] }
 0x156   :  { %v534_v25 = vpop.xlane.xlu0 %533  ;;  %993 = vst.msk [vmem:[%s2350_s2 + $0x70] sm:$0xff] %vm75_vm0, %v929_v12  ;;  %v861_v38 = vmul.f32 %v1192_v22, %v1081_v57  ;;  %1090 = vrsqrt.f32 %v737_v13  ;;  %v675_v40 = vmul.f32 0.03125, %v531_v35  ;;  %v1200_v13 = vld [vmem:[%s2348_s0 + $0xc0] sm:$0xff] }
 0x157   :  { %v676_v41 = vmul.f32 0.03125, %v534_v25  ;;  %v930_v2 = vmul.f32 %v1834_v39, %v860_v34  ;;  %1092 = vrsqrt.f32 %v738_v56 }
 0x158   :  { %v1083_v60 = vpop.eup %1082  ;;  %v931_v61 = vmul.f32 %v1834_v39, %v861_v38  ;;  %v739_v42 = vadd.f32 1e-05, %v675_v40 }
 0x159   :  { %v740_v43 = vadd.f32 1e-05, %v676_v41  ;;  %v1085_v5 = vpop.eup %1084  ;;  %994 = vst.msk [vmem:[%s2350_s2 + $0x78] sm:$0xff] %vm75_vm0, %v930_v2  ;;  %v862_v47 = vmul.f32 %v1193_v7, %v1083_v60  ;;  %v537_v6 = vpop.xlane.xlu1 %536  ;;  %v1201_v41 = vld [vmem:[%s2348_s0 + $0xc8] sm:$0xff] }
 0x15a   :  { %v540_v28 = vpop.xlane.xlu0 %539  ;;  %995 = vst.msk [vmem:[%s2350_s2 + $0x80] sm:$0xff] %vm75_vm0, %v931_v61  ;;  %v863_v44 = vmul.f32 %v1194_v29, %v1085_v5  ;;  %1094 = vrsqrt.f32 %v739_v42  ;;  %v677_v50 = vmul.f32 0.03125, %v537_v6  ;;  %v1202_v42 = vld [vmem:[%s2348_s0 + $0xd0] sm:$0xff] }
 0x15b   :  { %v678_v51 = vmul.f32 0.03125, %v540_v28  ;;  %v932_v3 = vmul.f32 %v1834_v39, %v862_v47  ;;  %1096 = vrsqrt.f32 %v740_v43 }
 0x15c   :  { %v1087_v4 = vpop.eup %1086  ;;  %v933_v45 = vmul.f32 %v1834_v39, %v863_v44  ;;  %v741_v16 = vadd.f32 1e-05, %v677_v50 }
 0x15d   :  { %v742_v17 = vadd.f32 1e-05, %v678_v51  ;;  %v1089_v30 = vpop.eup %1088  ;;  %996 = vst.msk [vmem:[%s2350_s2 + $0x88] sm:$0xff] %vm75_vm0, %v932_v3  ;;  %v864_v31 = vmul.f32 %v1195_v46, %v1087_v4  ;;  %v543_v62 = vpop.xlane.xlu1 %542  ;;  %v1203_v51 = vld [vmem:[%s2348_s0 + $0xd8] sm:$0xff] }
 0x15e   :  { %v546_v8 = vpop.xlane.xlu0 %545  ;;  %997 = vst.msk [vmem:[%s2350_s2 + $0x90] sm:$0xff] %vm75_vm0, %v933_v45  ;;  %v865_v59 = vmul.f32 %v1196_v58, %v1089_v30  ;;  %1098 = vrsqrt.f32 %v741_v16  ;;  %v679_v10 = vmul.f32 0.03125, %v543_v62  ;;  %v1204_v16 = vld [vmem:[%s2348_s0 + $0xe0] sm:$0xff] }
 0x15f   :  { %v680_v11 = vmul.f32 0.03125, %v546_v8  ;;  %v934_v9 = vmul.f32 %v1834_v39, %v864_v31  ;;  %1100 = vrsqrt.f32 %v742_v17 }
 0x160   :  { %v1091_v48 = vpop.eup %1090  ;;  %v935_v49 = vmul.f32 %v1834_v39, %v865_v59  ;;  %v743_v32 = vadd.f32 1e-05, %v679_v10 }
 0x161   :  { %v744_v33 = vadd.f32 1e-05, %v680_v11  ;;  %v1093_v63 = vpop.eup %1092  ;;  %998 = vst.msk [vmem:[%s2350_s2 + $0x98] sm:$0xff] %vm75_vm0, %v934_v9  ;;  %v866_v20 = vmul.f32 %v1197_v14, %v1091_v48  ;;  %v549_v18 = vpop.xlane.xlu1 %548  ;;  %v1205_v11 = vld [vmem:[%s2348_s0 + $0xe8] sm:$0xff] }
 0x162   :  { %v552_v19 = vpop.xlane.xlu0 %551  ;;  %999 = vst.msk [vmem:[%s2350_s2 + $0xa0] sm:$0xff] %vm75_vm0, %v935_v49  ;;  %v867_v15 = vmul.f32 %v1198_v21, %v1093_v63  ;;  %1102 = vrsqrt.f32 %v743_v32  ;;  %v681_v0 = vmul.f32 0.03125, %v549_v18  ;;  %v1206_v32 = vld [vmem:[%s2348_s0 + $0xf0] sm:$0xff] }
 0x163   :  { %v682_v52 = vmul.f32 0.03125, %v552_v19  ;;  %v936_v53 = vmul.f32 %v1834_v39, %v866_v20  ;;  %1104 = vrsqrt.f32 %v744_v33 }
 0x164   :  { %v1095_v55 = vpop.eup %1094  ;;  %v937_v1 = vmul.f32 %v1834_v39, %v867_v15  ;;  %v745_v36 = vadd.f32 1e-05, %v681_v0 }
 0x165   :  { %v746_v26 = vadd.f32 1e-05, %v682_v52  ;;  %v1097_v27 = vpop.eup %1096  ;;  %1000 = vst.msk [vmem:[%s2350_s2 + $0xa8] sm:$0xff] %vm75_vm0, %v936_v53  ;;  %v868_v54 = vmul.f32 %v1199_v37, %v1095_v55  ;;  %v555_v23 = vpop.xlane.xlu1 %554  ;;  %v1207_v52 = vld [vmem:[%s2348_s0 + $0xf8] sm:$0xff] }
 0x166   :  { %v558_v12 = vpop.xlane.xlu0 %557  ;;  %1001 = vst.msk [vmem:[%s2350_s2 + $0xb0] sm:$0xff] %vm75_vm0, %v937_v1  ;;  %v869_v56 = vmul.f32 %v1200_v13, %v1097_v27  ;;  %1106 = vrsqrt.f32 %v745_v36  ;;  %v683_v57 = vmul.f32 0.03125, %v555_v23  ;;  %v1208_v36 = vld [vmem:[%s2348_s0 + $0x100] sm:$0xff] }
 0x167   :  { %v684_v24 = vmul.f32 0.03125, %v558_v12  ;;  %v938_v34 = vmul.f32 %v1834_v39, %v868_v54  ;;  %1108 = vrsqrt.f32 %v746_v26 }
 0x168   :  { %v1099_v35 = vpop.eup %1098  ;;  %v939_v25 = vmul.f32 %v1834_v39, %v869_v56  ;;  %v747_v22 = vadd.f32 1e-05, %v683_v57 }
 0x169   :  { %v748_v38 = vadd.f32 1e-05, %v684_v24  ;;  %v1101_v40 = vpop.eup %1100  ;;  %1002 = vst.msk [vmem:[%s2350_s2 + $0xb8] sm:$0xff] %vm75_vm0, %v938_v34  ;;  %v870_v2 = vmul.f32 %v1201_v41, %v1099_v35  ;;  %v561_v60 = vpop.xlane.xlu1 %560  ;;  %v1209_v24 = vld [vmem:[%s2348_s0 + $0x108] sm:$0xff] }
 0x16a   :  { %v564_v61 = vpop.xlane.xlu0 %563  ;;  %1003 = vst.msk [vmem:[%s2350_s2 + $0xc0] sm:$0xff] %vm75_vm0, %v939_v25  ;;  %v871_v43 = vmul.f32 %v1202_v42, %v1101_v40  ;;  %1110 = vrsqrt.f32 %v747_v22  ;;  %v685_v5 = vmul.f32 0.03125, %v561_v60  ;;  %v1210_v22 = vld [vmem:[%s2348_s0 + $0x110] sm:$0xff] }
 0x16b   :  { %v686_v7 = vmul.f32 0.03125, %v564_v61  ;;  %v940_v47 = vmul.f32 %v1834_v39, %v870_v2  ;;  %1112 = vrsqrt.f32 %v748_v38 }
 0x16c   :  { %v1103_v6 = vpop.eup %1102  ;;  %v941_v28 = vmul.f32 %v1834_v39, %v871_v43  ;;  %v749_v29 = vadd.f32 1e-05, %v685_v5 }
 0x16d   :  { %v750_v44 = vadd.f32 1e-05, %v686_v7  ;;  %v1105_v50 = vpop.eup %1104  ;;  %1004 = vst.msk [vmem:[%s2350_s2 + $0xc8] sm:$0xff] %vm75_vm0, %v940_v47  ;;  %v872_v3 = vmul.f32 %v1203_v51, %v1103_v6  ;;  %v567_v4 = vpop.xlane.xlu1 %566  ;;  %v1211_v7 = vld [vmem:[%s2348_s0 + $0x118] sm:$0xff] }
 0x16e   :  { %v570_v45 = vpop.xlane.xlu0 %569  ;;  %1005 = vst.msk [vmem:[%s2350_s2 + $0xd0] sm:$0xff] %vm75_vm0, %v941_v28  ;;  %v873_v17 = vmul.f32 %v1204_v16, %v1105_v50  ;;  %1114 = vrsqrt.f32 %v749_v29  ;;  %v687_v30 = vmul.f32 0.03125, %v567_v4  ;;  %v1212_v29 = vld [vmem:[%s2348_s0 + $0x120] sm:$0xff] }
 0x16f   :  { %v688_v46 = vmul.f32 0.03125, %v570_v45  ;;  %v942_v31 = vmul.f32 %v1834_v39, %v872_v3  ;;  %1116 = vrsqrt.f32 %v750_v44 }
 0x170   :  { %v1107_v62 = vpop.eup %1106  ;;  %v943_v8 = vmul.f32 %v1834_v39, %v873_v17  ;;  %v751_v58 = vadd.f32 1e-05, %v687_v30 }
 0x171   :  { %v752_v59 = vadd.f32 1e-05, %v688_v46  ;;  %v1109_v10 = vpop.eup %1108  ;;  %1006 = vst.msk [vmem:[%s2350_s2 + $0xd8] sm:$0xff] %vm75_vm0, %v942_v31  ;;  %v874_v9 = vmul.f32 %v1205_v11, %v1107_v62  ;;  %v573_v48 = vpop.xlane.xlu1 %572  ;;  %v1213_v46 = vld [vmem:[%s2348_s0 + $0x128] sm:$0xff] }
 0x172   :  { %v576_v49 = vpop.xlane.xlu0 %575  ;;  %1007 = vst.msk [vmem:[%s2350_s2 + $0xe0] sm:$0xff] %vm75_vm0, %v943_v8  ;;  %v875_v33 = vmul.f32 %v1206_v32, %v1109_v10  ;;  %1118 = vrsqrt.f32 %v751_v58  ;;  %v689_v63 = vmul.f32 0.03125, %v573_v48  ;;  %v1214_v58 = vld [vmem:[%s2348_s0 + $0x130] sm:$0xff] }
 0x173   :  { %v690_v14 = vmul.f32 0.03125, %v576_v49  ;;  %v944_v20 = vmul.f32 %v1834_v39, %v874_v9  ;;  %1120 = vrsqrt.f32 %v752_v59 }
 0x174   :  { %v1111_v18 = vpop.eup %1110  ;;  %v945_v19 = vmul.f32 %v1834_v39, %v875_v33  ;;  %v753_v21 = vadd.f32 1e-05, %v689_v63 }
 0x175   :  { %v754_v15 = vadd.f32 1e-05, %v690_v14  ;;  %v1113_v0 = vpop.eup %1112  ;;  %1008 = vst.msk [vmem:[%s2350_s2 + $0xe8] sm:$0xff] %vm75_vm0, %v944_v20  ;;  %v876_v53 = vmul.f32 %v1207_v52, %v1111_v18  ;;  %v579_v55 = vpop.xlane.xlu1 %578  ;;  %v1215_v14 = vld [vmem:[%s2348_s0 + $0x138] sm:$0xff] }
 0x176   :  { %v582_v1 = vpop.xlane.xlu0 %581  ;;  %1009 = vst.msk [vmem:[%s2350_s2 + $0xf0] sm:$0xff] %vm75_vm0, %v945_v19  ;;  %v877_v26 = vmul.f32 %v1208_v36, %v1113_v0  ;;  %1122 = vrsqrt.f32 %v753_v21  ;;  %v691_v27 = vmul.f32 0.03125, %v579_v55  ;;  %v1216_v21 = vld [vmem:[%s2348_s0 + $0x140] sm:$0xff] }
 0x177   :  { %v692_v37 = vmul.f32 0.03125, %v582_v1  ;;  %v946_v54 = vmul.f32 %v1834_v39, %v876_v53  ;;  %1124 = vrsqrt.f32 %v754_v15 }
 0x178   :  { %v1115_v23 = vpop.eup %1114  ;;  %v947_v12 = vmul.f32 %v1834_v39, %v877_v26  ;;  %v755_v13 = vadd.f32 1e-05, %v691_v27 }
 0x179   :  { %v756_v56 = vadd.f32 1e-05, %v692_v37  ;;  %v1117_v57 = vpop.eup %1116  ;;  %1010 = vst.msk [vmem:[%s2350_s2 + $0xf8] sm:$0xff] %vm75_vm0, %v946_v54  ;;  %v878_v34 = vmul.f32 %v1209_v24, %v1115_v23  ;;  %v585_v35 = vpop.xlane.xlu1 %584  ;;  %v1217_v37 = vld [vmem:[%s2348_s0 + $0x148] sm:$0xff] }
 0x17a   :  { %v588_v25 = vpop.xlane.xlu0 %587  ;;  %1011 = vst.msk [vmem:[%s2350_s2 + $0x100] sm:$0xff] %vm75_vm0, %v947_v12  ;;  %v879_v38 = vmul.f32 %v1210_v22, %v1117_v57  ;;  %1126 = vrsqrt.f32 %v755_v13  ;;  %v693_v40 = vmul.f32 0.03125, %v585_v35  ;;  %v1218_v13 = vld [vmem:[%s2348_s0 + $0x150] sm:$0xff] }
 0x17b   :  { %v694_v41 = vmul.f32 0.03125, %v588_v25  ;;  %v948_v2 = vmul.f32 %v1834_v39, %v878_v34  ;;  %1128 = vrsqrt.f32 %v756_v56 }
 0x17c   :  { %v1119_v60 = vpop.eup %1118  ;;  %v949_v61 = vmul.f32 %v1834_v39, %v879_v38  ;;  %v757_v42 = vadd.f32 1e-05, %v693_v40 }
 0x17d   :  { %v758_v43 = vadd.f32 1e-05, %v694_v41  ;;  %v1121_v5 = vpop.eup %1120  ;;  %1012 = vst.msk [vmem:[%s2350_s2 + $0x108] sm:$0xff] %vm75_vm0, %v948_v2  ;;  %v880_v47 = vmul.f32 %v1211_v7, %v1119_v60  ;;  %v591_v6 = vpop.xlane.xlu1 %590  ;;  %v1219_v41 = vld [vmem:[%s2348_s0 + $0x158] sm:$0xff] }
 0x17e   :  { %v594_v28 = vpop.xlane.xlu0 %593  ;;  %1013 = vst.msk [vmem:[%s2350_s2 + $0x110] sm:$0xff] %vm75_vm0, %v949_v61  ;;  %v881_v44 = vmul.f32 %v1212_v29, %v1121_v5  ;;  %1130 = vrsqrt.f32 %v757_v42  ;;  %v695_v50 = vmul.f32 0.03125, %v591_v6  ;;  %v1220_v42 = vld [vmem:[%s2348_s0 + $0x160] sm:$0xff] }
 0x17f   :  { %v696_v51 = vmul.f32 0.03125, %v594_v28  ;;  %v950_v3 = vmul.f32 %v1834_v39, %v880_v47  ;;  %1132 = vrsqrt.f32 %v758_v43 }
 0x180   :  { %v1123_v4 = vpop.eup %1122  ;;  %v951_v45 = vmul.f32 %v1834_v39, %v881_v44  ;;  %v759_v16 = vadd.f32 1e-05, %v695_v50 }
 0x181   :  { %v760_v17 = vadd.f32 1e-05, %v696_v51  ;;  %v1125_v30 = vpop.eup %1124  ;;  %1014 = vst.msk [vmem:[%s2350_s2 + $0x118] sm:$0xff] %vm75_vm0, %v950_v3  ;;  %v882_v31 = vmul.f32 %v1213_v46, %v1123_v4  ;;  %v597_v62 = vpop.xlane.xlu1 %596  ;;  %v1221_v51 = vld [vmem:[%s2348_s0 + $0x168] sm:$0xff] }
 0x182   :  { %v600_v8 = vpop.xlane.xlu0 %599  ;;  %1015 = vst.msk [vmem:[%s2350_s2 + $0x120] sm:$0xff] %vm75_vm0, %v951_v45  ;;  %v883_v59 = vmul.f32 %v1214_v58, %v1125_v30  ;;  %1134 = vrsqrt.f32 %v759_v16  ;;  %v697_v10 = vmul.f32 0.03125, %v597_v62  ;;  %v1222_v16 = vld [vmem:[%s2348_s0 + $0x170] sm:$0xff] }
 0x183   :  { %v698_v11 = vmul.f32 0.03125, %v600_v8  ;;  %v952_v9 = vmul.f32 %v1834_v39, %v882_v31  ;;  %1136 = vrsqrt.f32 %v760_v17 }
 0x184   :  { %v1127_v48 = vpop.eup %1126  ;;  %v953_v49 = vmul.f32 %v1834_v39, %v883_v59  ;;  %v761_v32 = vadd.f32 1e-05, %v697_v10 }
 0x185   :  { %v762_v33 = vadd.f32 1e-05, %v698_v11  ;;  %v1129_v63 = vpop.eup %1128  ;;  %1016 = vst.msk [vmem:[%s2350_s2 + $0x128] sm:$0xff] %vm75_vm0, %v952_v9  ;;  %v884_v20 = vmul.f32 %v1215_v14, %v1127_v48  ;;  %v603_v18 = vpop.xlane.xlu1 %602  ;;  %v1223_v11 = vld [vmem:[%s2348_s0 + $0x178] sm:$0xff] }
 0x186   :  { %v606_v19 = vpop.xlane.xlu0 %605  ;;  %1017 = vst.msk [vmem:[%s2350_s2 + $0x130] sm:$0xff] %vm75_vm0, %v953_v49  ;;  %v885_v15 = vmul.f32 %v1216_v21, %v1129_v63  ;;  %1138 = vrsqrt.f32 %v761_v32  ;;  %v699_v0 = vmul.f32 0.03125, %v603_v18  ;;  %v1224_v32 = vld [vmem:[%s2348_s0 + $0x180] sm:$0xff] }
 0x187   :  { %v700_v52 = vmul.f32 0.03125, %v606_v19  ;;  %v954_v53 = vmul.f32 %v1834_v39, %v884_v20  ;;  %1140 = vrsqrt.f32 %v762_v33 }
 0x188   :  { %v1131_v55 = vpop.eup %1130  ;;  %v955_v1 = vmul.f32 %v1834_v39, %v885_v15  ;;  %v763_v36 = vadd.f32 1e-05, %v699_v0 }
 0x189   :  { %v764_v26 = vadd.f32 1e-05, %v700_v52  ;;  %v1133_v27 = vpop.eup %1132  ;;  %1018 = vst.msk [vmem:[%s2350_s2 + $0x138] sm:$0xff] %vm75_vm0, %v954_v53  ;;  %v886_v54 = vmul.f32 %v1217_v37, %v1131_v55  ;;  %v609_v23 = vpop.xlane.xlu1 %608  ;;  %v1225_v52 = vld [vmem:[%s2348_s0 + $0x188] sm:$0xff] }
 0x18a   :  { %v612_v12 = vpop.xlane.xlu0 %611  ;;  %1019 = vst.msk [vmem:[%s2350_s2 + $0x140] sm:$0xff] %vm75_vm0, %v955_v1  ;;  %v887_v56 = vmul.f32 %v1218_v13, %v1133_v27  ;;  %1142 = vrsqrt.f32 %v763_v36  ;;  %v701_v57 = vmul.f32 0.03125, %v609_v23  ;;  %v1226_v36 = vld [vmem:[%s2348_s0 + $0x190] sm:$0xff] }
 0x18b   :  { %v702_v24 = vmul.f32 0.03125, %v612_v12  ;;  %v956_v34 = vmul.f32 %v1834_v39, %v886_v54  ;;  %1144 = vrsqrt.f32 %v764_v26 }
 0x18c   :  { %v1135_v35 = vpop.eup %1134  ;;  %v957_v25 = vmul.f32 %v1834_v39, %v887_v56  ;;  %v765_v22 = vadd.f32 1e-05, %v701_v57 }
 0x18d   :  { %v766_v38 = vadd.f32 1e-05, %v702_v24  ;;  %v1137_v40 = vpop.eup %1136  ;;  %1020 = vst.msk [vmem:[%s2350_s2 + $0x148] sm:$0xff] %vm75_vm0, %v956_v34  ;;  %v888_v2 = vmul.f32 %v1219_v41, %v1135_v35  ;;  %v615_v60 = vpop.xlane.xlu1 %614  ;;  %v1227_v24 = vld [vmem:[%s2348_s0 + $0x198] sm:$0xff] }
 0x18e   :  { %v618_v61 = vpop.xlane.xlu0 %617  ;;  %1021 = vst.msk [vmem:[%s2350_s2 + $0x150] sm:$0xff] %vm75_vm0, %v957_v25  ;;  %v889_v43 = vmul.f32 %v1220_v42, %v1137_v40  ;;  %1146 = vrsqrt.f32 %v765_v22  ;;  %v703_v5 = vmul.f32 0.03125, %v615_v60  ;;  %v1228_v22 = vld [vmem:[%s2348_s0 + $0x1a0] sm:$0xff] }
 0x18f   :  { %v704_v7 = vmul.f32 0.03125, %v618_v61  ;;  %v958_v47 = vmul.f32 %v1834_v39, %v888_v2  ;;  %1148 = vrsqrt.f32 %v766_v38 }
 0x190   :  { %v1139_v6 = vpop.eup %1138  ;;  %v959_v28 = vmul.f32 %v1834_v39, %v889_v43  ;;  %v767_v29 = vadd.f32 1e-05, %v703_v5 }
 0x191   :  { %v768_v44 = vadd.f32 1e-05, %v704_v7  ;;  %v1141_v50 = vpop.eup %1140  ;;  %1022 = vst.msk [vmem:[%s2350_s2 + $0x158] sm:$0xff] %vm75_vm0, %v958_v47  ;;  %v890_v3 = vmul.f32 %v1221_v51, %v1139_v6  ;;  %v621_v4 = vpop.xlane.xlu1 %620  ;;  %v1229_v7 = vld [vmem:[%s2348_s0 + $0x1a8] sm:$0xff] }
 0x192   :  { %v624_v45 = vpop.xlane.xlu0 %623  ;;  %1023 = vst.msk [vmem:[%s2350_s2 + $0x160] sm:$0xff] %vm75_vm0, %v959_v28  ;;  %v891_v17 = vmul.f32 %v1222_v16, %v1141_v50  ;;  %1150 = vrsqrt.f32 %v767_v29  ;;  %v705_v30 = vmul.f32 0.03125, %v621_v4  ;;  %v1230_v29 = vld [vmem:[%s2348_s0 + $0x1b0] sm:$0xff] }
 0x193   :  { %v706_v46 = vmul.f32 0.03125, %v624_v45  ;;  %v960_v31 = vmul.f32 %v1834_v39, %v890_v3  ;;  %1152 = vrsqrt.f32 %v768_v44 }
 0x194   :  { %v1143_v62 = vpop.eup %1142  ;;  %v961_v8 = vmul.f32 %v1834_v39, %v891_v17  ;;  %v769_v58 = vadd.f32 1e-05, %v705_v30 }
 0x195   :  { %v770_v59 = vadd.f32 1e-05, %v706_v46  ;;  %v1145_v10 = vpop.eup %1144  ;;  %1024 = vst.msk [vmem:[%s2350_s2 + $0x168] sm:$0xff] %vm75_vm0, %v960_v31  ;;  %v892_v9 = vmul.f32 %v1223_v11, %v1143_v62  ;;  %v627_v48 = vpop.xlane.xlu1 %626  ;;  %v1231_v46 = vld [vmem:[%s2348_s0 + $0x1b8] sm:$0xff] }
 0x196   :  { %v630_v49 = vpop.xlane.xlu0 %629  ;;  %1025 = vst.msk [vmem:[%s2350_s2 + $0x170] sm:$0xff] %vm75_vm0, %v961_v8  ;;  %v893_v33 = vmul.f32 %v1224_v32, %v1145_v10  ;;  %1154 = vrsqrt.f32 %v769_v58  ;;  %v707_v63 = vmul.f32 0.03125, %v627_v48  ;;  %v1232_v8 = vld [vmem:[%s2348_s0 + $0x1c0] sm:$0xff]  ;;  %v1233_v32 = vld [vmem:[%s2348_s0 + $0x1c8] sm:$0xff] }
 0x197   :  { %v708_v14 = vmul.f32 0.03125, %v630_v49  ;;  %v962_v20 = vmul.f32 %v1834_v39, %v892_v9  ;;  %1156 = vrsqrt.f32 %v770_v59 }
 0x198   :  { %v1147_v18 = vpop.eup %1146  ;;  %v963_v19 = vmul.f32 %v1834_v39, %v893_v33  ;;  %v771_v21 = vadd.f32 1e-05, %v707_v63  ;;  %v1234_v63 = vld [vmem:[%s2348_s0 + $0x1d0] sm:$0xff] }
 0x199   :  { %v772_v15 = vadd.f32 1e-05, %v708_v14  ;;  %v1149_v0 = vpop.eup %1148  ;;  %1026 = vst.msk [vmem:[%s2350_s2 + $0x178] sm:$0xff] %vm75_vm0, %v962_v20  ;;  %v894_v53 = vmul.f32 %v1225_v52, %v1147_v18  ;;  %v633_v55 = vpop.xlane.xlu1 %632  ;;  %v1236_v52 = vld [vmem:[%s2348_s0 + $0x1e0] sm:$0xff] }
 0x19a   :  { %v636_v1 = vpop.xlane.xlu0 %635  ;;  %1027 = vst.msk [vmem:[%s2350_s2 + $0x180] sm:$0xff] %vm75_vm0, %v963_v19  ;;  %v895_v26 = vmul.f32 %v1226_v36, %v1149_v0  ;;  %1158 = vrsqrt.f32 %v771_v21  ;;  %v709_v27 = vmul.f32 0.03125, %v633_v55 }
 0x19b   :  { %v710_v37 = vmul.f32 0.03125, %v636_v1  ;;  %v964_v54 = vmul.f32 %v1834_v39, %v894_v53  ;;  %1160 = vrsqrt.f32 %v772_v15  ;;  %v1235_v15 = vld [vmem:[%s2348_s0 + $0x1d8] sm:$0xff] }
 0x19c   :  { %v1151_v23 = vpop.eup %1150  ;;  %v965_v12 = vmul.f32 %v1834_v39, %v895_v26  ;;  %v773_v13 = vadd.f32 1e-05, %v709_v27  ;;  %v1237_v27 = vld [vmem:[%s2348_s0 + $0x1e8] sm:$0xff] }
 0x19d   :  { %v774_v56 = vadd.f32 1e-05, %v710_v37  ;;  %v1153_v57 = vpop.eup %1152  ;;  %1028 = vst.msk [vmem:[%s2350_s2 + $0x188] sm:$0xff] %vm75_vm0, %v964_v54  ;;  %v896_v34 = vmul.f32 %v1227_v24, %v1151_v23  ;;  %v639_v35 = vpop.xlane.xlu1 %638  ;;  %v1238_v54 = vld [vmem:[%s2348_s0 + $0x1f0] sm:$0xff] }
 0x19e   :  { %v642_v25 = vpop.xlane.xlu0 %641  ;;  %1029 = vst.msk [vmem:[%s2350_s2 + $0x190] sm:$0xff] %vm75_vm0, %v965_v12  ;;  %v897_v38 = vmul.f32 %v1228_v22, %v1153_v57  ;;  %1162 = vrsqrt.f32 %v773_v13  ;;  %v711_v40 = vmul.f32 0.03125, %v639_v35  ;;  %v1239_v57 = vld [vmem:[%s2348_s0 + $0x1f8] sm:$0xff] }
 0x19f   :  { %v712_v41 = vmul.f32 0.03125, %v642_v25  ;;  %v966_v2 = vmul.f32 %v1834_v39, %v896_v34  ;;  %1164 = vrsqrt.f32 %v774_v56 }
 0x1a0   :  { %v1155_v60 = vpop.eup %1154  ;;  %v967_v61 = vmul.f32 %v1834_v39, %v897_v38  ;;  %v775_v42 = vadd.f32 1e-05, %v711_v40 }
 0x1a1   :  { %v776_v43 = vadd.f32 1e-05, %v712_v41  ;;  %v1157_v5 = vpop.eup %1156  ;;  %1030 = vst.msk [vmem:[%s2350_s2 + $0x198] sm:$0xff] %vm75_vm0, %v966_v2  ;;  %v898_v47 = vmul.f32 %v1229_v7, %v1155_v60  ;;  %v645_v6 = vpop.xlane.xlu1 %644 }
 0x1a2   :  { %v648_v28 = vpop.xlane.xlu0 %647  ;;  %1031 = vst.msk [vmem:[%s2350_s2 + $0x1a0] sm:$0xff] %vm75_vm0, %v967_v61  ;;  %v899_v44 = vmul.f32 %v1230_v29, %v1157_v5  ;;  %1166 = vrsqrt.f32 %v775_v42  ;;  %v713_v50 = vmul.f32 0.03125, %v645_v6 }
 0x1a3   :  { %v714_v51 = vmul.f32 0.03125, %v648_v28  ;;  %v968_v3 = vmul.f32 %v1834_v39, %v898_v47  ;;  %1168 = vrsqrt.f32 %v776_v43 }
 0x1a4   :  { %v1159_v4 = vpop.eup %1158  ;;  %v969_v45 = vmul.f32 %v1834_v39, %v899_v44  ;;  %v777_v16 = vadd.f32 1e-05, %v713_v50 }
 0x1a5   :  { %v778_v17 = vadd.f32 1e-05, %v714_v51  ;;  %v1161_v30 = vpop.eup %1160  ;;  %1032 = vst.msk [vmem:[%s2350_s2 + $0x1a8] sm:$0xff] %vm75_vm0, %v968_v3  ;;  %v900_v31 = vmul.f32 %v1231_v46, %v1159_v4  ;;  %v651_v62 = vpop.xlane.xlu1 %650 }
 0x1a6   :  { %1033 = vst.msk [vmem:[%s2350_s2 + $0x1b0] sm:$0xff] %vm75_vm0, %v969_v45  ;;  %v901_v58 = vmul.f32 %v1232_v8, %v1161_v30  ;;  %1170 = vrsqrt.f32 %v777_v16  ;;  %v715_v59 = vmul.f32 0.03125, %v651_v62 }
 0x1a7   :  { %v970_v10 = vmul.f32 %v1834_v39, %v900_v31  ;;  %1172 = vrsqrt.f32 %v778_v17 }
 0x1a8   :  { %v1163_v11 = vpop.eup %1162  ;;  %v971_v9 = vmul.f32 %v1834_v39, %v901_v58  ;;  %v779_v48 = vadd.f32 1e-05, %v715_v59 }
 0x1a9   :  { %v1165_v49 = vpop.eup %1164  ;;  %1034 = vst.msk [vmem:[%s2350_s2 + $0x1b8] sm:$0xff] %vm75_vm0, %v970_v10  ;;  %v902_v33 = vmul.f32 %v1233_v32, %v1163_v11 }
 0x1aa   :  { %1035 = vst.msk [vmem:[%s2350_s2 + $0x1c0] sm:$0xff] %vm75_vm0, %v971_v9  ;;  %v903_v14 = vmul.f32 %v1234_v63, %v1165_v49  ;;  %1174 = vrsqrt.f32 %v779_v48 }
 0x1ab   :  { %v972_v20 = vmul.f32 %v1834_v39, %v902_v33 }
 0x1ac   :  { %v1167_v18 = vpop.eup %1166  ;;  %v973_v19 = vmul.f32 %v1834_v39, %v903_v14 }
 0x1ad   :  { %v1169_v21 = vpop.eup %1168  ;;  %1036 = vst.msk [vmem:[%s2350_s2 + $0x1c8] sm:$0xff] %vm75_vm0, %v972_v20  ;;  %v904_v0 = vmul.f32 %v1235_v15, %v1167_v18 }
 0x1ae   :  { %1037 = vst.msk [vmem:[%s2350_s2 + $0x1d0] sm:$0xff] %vm75_vm0, %v973_v19  ;;  %v905_v53 = vmul.f32 %v1236_v52, %v1169_v21 }
 0x1af   :  { %v974_v55 = vmul.f32 %v1834_v39, %v904_v0 }
 0x1b0   :  { %v1171_v1 = vpop.eup %1170  ;;  %v975_v36 = vmul.f32 %v1834_v39, %v905_v53 }
 0x1b1   :  { %v1173_v26 = vpop.eup %1172  ;;  %1038 = vst.msk [vmem:[%s2350_s2 + $0x1d8] sm:$0xff] %vm75_vm0, %v974_v55  ;;  %v906_v37 = vmul.f32 %v1237_v27, %v1171_v1 }
 0x1b2   :  { %1039 = vst.msk [vmem:[%s2350_s2 + $0x1e0] sm:$0xff] %vm75_vm0, %v975_v36  ;;  %v907_v23 = vmul.f32 %v1238_v54, %v1173_v26 }
 0x1b3   :  { %v976_v12 = vmul.f32 %v1834_v39, %v906_v37 }
 0x1b4   :  { %v1175_v13 = vpop.eup %1174  ;;  %v977_v56 = vmul.f32 %v1834_v39, %v907_v23 }
 0x1b5   :  { %1040 = vst.msk [vmem:[%s2350_s2 + $0x1e8] sm:$0xff] %vm75_vm0, %v976_v12  ;;  %v908_v24 = vmul.f32 %v1239_v57, %v1175_v13 }
 0x1b6   :  { %1041 = vst.msk [vmem:[%s2350_s2 + $0x1f0] sm:$0xff] %vm75_vm0, %v977_v56 }
 0x1b7   :  { %v978_v34 = vmul.f32 %v1834_v39, %v908_v24 }
 0x1b9   :  { %1042 = vst.msk [vmem:[%s2350_s2 + $0x1f8] sm:$0xff] %vm75_vm0, %v978_v34 }

</bundles_post_ra>
